<compile_context>
chip_gen: v7x
topology: tpu7x:2x2x1
jax: 0.10.0
libtpu: 0.0.40
codegen_flags: <defaults>
</compile_context>

<pallas_src>
import functools
import math

import jax
import jax.numpy as jnp
from jax.experimental import pallas as pl
from jax.experimental.pallas import tpu as pltpu


# ---------------------------------------------------------------------------
# In-kernel math helpers
# ---------------------------------------------------------------------------
def _layer_norm(x, g, b, eps=1e-5):
    # stats in f32; g, b are (1, dim) and broadcast over (bb, n, dim)
    mu = jnp.mean(x, axis=-1, keepdims=True)
    var = jnp.mean(jnp.square(x - mu), axis=-1, keepdims=True)
    return (x - mu) * jax.lax.rsqrt(var + eps) * g + b


def _gelu_tanh(x):
    # tanh-approx GELU (EUP tanh + a few VALU ops) -- see TODO(synk) above.
    c = math.sqrt(2.0 / math.pi)
    return 0.5 * x * (1.0 + jnp.tanh(c * (x + 0.044715 * (x * x * x))))


# ---------------------------------------------------------------------------
# Fused Pallas kernel: grid = (batch_blocks, depth); one call runs the whole stack
# ---------------------------------------------------------------------------
def transformer_kernel(
    x_ref,                                     # (bb, n, dim)              f32
    ln1g_ref, ln1b_ref,                        # (1, 1, dim)               f32
    wqkv_ref,                                  # (1, dim, 3*inner)         bf16 (q cols pre-scaled)
    wo_ref,                                    # (1, heads, dim_head, dim) bf16
    bo_ref,                                    # (1, 1, dim)               f32
    ln2g_ref, ln2b_ref,                        # (1, 1, dim)               f32
    w1_ref,                                    # (1, dim, mlp)             bf16
    b1_ref,                                    # (1, 1, mlp)               f32
    w2_ref,                                    # (1, mlp, dim)             bf16
    b2_ref,                                    # (1, 1, dim)               f32
    o_ref,                                     # (bb, n, dim)              f32
    xcur_ref,                                  # VMEM scratch (bb, n, dim) f32 -- carried over depth
    *, heads, dim_head,
):
    layer = pl.program_id(1)

    @pl.when(layer == 0)
    def _load_input():
        xcur_ref[...] = x_ref[...]

    x = xcur_ref[...]                          # (bb, n, dim) f32
    bb, n, dim = x.shape
    m = bb * n
    inner = heads * dim_head

    def mm(a, w):
        # plain 2D matmul, f32 accumulation
        return jnp.dot(a, w, preferred_element_type=jnp.float32)

    def bmm(lhs, rhs, rhs_contract):
        # batch-block-batched matmul (single leading batch dim), f32 accumulation
        return jax.lax.dot_general(
            lhs, rhs, (((2,), (rhs_contract,)), ((0,), (0,))),
            preferred_element_type=jnp.float32)

    # ---------------- PreNorm + multi-head self-attention ----------------
    xn = _layer_norm(x, ln1g_ref[0], ln1b_ref[0]).astype(jnp.bfloat16)   # (bb, n, dim)
    # one lane-dense QKV projection; scale already folded into the q weight columns
    qkv = mm(xn.reshape(m, dim), wqkv_ref[0])                            # (m, 3*inner) f32

    wo_all = wo_ref[0]                                                   # (heads, dh, dim) bf16
    acc = jnp.zeros((m, dim), jnp.float32)                               # output-projection accumulator
    for h in range(heads):
        lo = h * dim_head
        q_h = qkv[:, lo:lo + dim_head].reshape(bb, n, dim_head).astype(jnp.bfloat16)
        k_h = qkv[:, inner + lo:inner + lo + dim_head].reshape(bb, n, dim_head).astype(jnp.bfloat16)
        v_h = qkv[:, 2 * inner + lo:2 * inner + lo + dim_head].reshape(bb, n, dim_head).astype(jnp.bfloat16)

        s = bmm(q_h, k_h, 2)                                             # (bb, n, n) f32 (scale folded)
        s = s - jnp.max(s, axis=-1, keepdims=True)
        p = jnp.exp(s)
        l = jnp.sum(p, axis=-1, keepdims=True)                           # (bb, n, 1) f32
        ov = bmm(p.astype(jnp.bfloat16), v_h, 1)                         # (bb, n, dh) f32
        # normalize the small (n, dh) output instead of the (n, n) score matrix
        ov = ov * pl.reciprocal(l, approx=True)
        acc = acc + mm(ov.reshape(m, dim_head).astype(jnp.bfloat16), wo_all[h])

    x1 = x + acc.reshape(bb, n, dim) + bo_ref[0]                         # residual + W_o bias

    # ---------------- PreNorm + FeedForward (Linear -> GELU -> Linear) ----------------
    xn2 = _layer_norm(x1, ln2g_ref[0], ln2b_ref[0]).astype(jnp.bfloat16)
    h1 = mm(xn2.reshape(m, dim), w1_ref[0]) + b1_ref[0]                  # (m, mlp) f32
    h1 = _gelu_tanh(h1)
    h2 = mm(h1.astype(jnp.bfloat16), w2_ref[0]) + b2_ref[0]              # (m, dim) f32

    out = x1 + h2.reshape(bb, n, dim)
    xcur_ref[...] = out                                                  # carry to next layer

    # NOTE: correct only because the out index_map is independent of the depth axis, so the
    # single write at the last layer is what gets flushed to HBM once per batch block.
    @pl.when(layer == pl.num_programs(1) - 1)
    def _store_output():
        o_ref[...] = out


# ---------------------------------------------------------------------------
# Wrapper
# ---------------------------------------------------------------------------
_PARAM_ORDER = ("ln1_g", "ln1_b", "w_qkv", "wo", "b_o",
                "ln2_g", "ln2_b", "w1", "b1", "w2", "b2")


def _vmem_limit_bytes():
    # v5e/v6e (128 MiB physical): ~100 MiB; v7x (64 MiB physical): ~52 MiB with headroom.
    try:
        phys = int(pltpu.get_tpu_info().vmem_capacity_bytes)
        return max(32 * 1024 * 1024, min(phys - 12 * 1024 * 1024, 100 * 1024 * 1024))
    except Exception:
        return 48 * 1024 * 1024


def transformer(x, packed, *, batch_block=1):
    """x: (B, n, dim) f32; packed: depth-stacked kernel-layout weights (see pack_params).

    batch_block guidance: weight HBM traffic scales with B/batch_block, so prefer one fat
    batch block on v5e/v6e (single TensorCore) and exactly two blocks on v7x (one per core).
    """
    B, n, dim = x.shape
    depth = packed["w_qkv"].shape[0]
    heads, dim_head = packed["wo"].shape[1], packed["wo"].shape[2]
    assert B % batch_block == 0
    weights = [packed[name] for name in _PARAM_ORDER]

    def wspec(w):
        nd = w.ndim
        return pl.BlockSpec((1,) + w.shape[1:],
                            lambda bi, l, _nd=nd: (l,) + (0,) * (_nd - 1))

    in_specs = [pl.BlockSpec((batch_block, n, dim), lambda bi, l: (bi, 0, 0))]
    in_specs += [wspec(w) for w in weights]

    kernel = functools.partial(transformer_kernel, heads=heads, dim_head=dim_head)

    return pl.pallas_call(
        kernel,
        out_shape=jax.ShapeDtypeStruct((B, n, dim), jnp.float32),
        grid=(B // batch_block, depth),
        in_specs=in_specs,
        out_specs=pl.BlockSpec((batch_block, n, dim), lambda bi, l: (bi, 0, 0)),
        scratch_shapes=[pltpu.VMEM((batch_block, n, dim), jnp.float32)],
        compiler_params=pltpu.CompilerParams(
            dimension_semantics=("parallel", "arbitrary"),
            vmem_limit_bytes=_vmem_limit_bytes()),
    )(x, *weights)


def pack_params(layer_params, heads, dim_head):
    """Stack per-layer params over depth; fuse q/k/v; fold the attention scale into the q
    columns; split W_o per head; matmul weights -> bf16."""
    depth = len(layer_params)

    def stack(name):
        return jnp.stack([p[name] for p in layer_params], axis=0)

    w_qkv = stack("w_qkv")                               # (depth, dim, 3*inner) f32
    dim = w_qkv.shape[1]
    inner = heads * dim_head
    scale = dim_head ** (-0.5)
    col_scale = jnp.concatenate([jnp.full((inner,), scale, jnp.float32),
                                 jnp.ones((2 * inner,), jnp.float32)])
    w_qkv = (w_qkv * col_scale).astype(jnp.bfloat16)     # fold 1/sqrt(dh) into q columns

    wo = stack("w_o").reshape(depth, heads, dim_head, dim).astype(jnp.bfloat16)

    return dict(
        ln1_g=stack("ln1_g"), ln1_b=stack("ln1_b"),
        w_qkv=w_qkv, wo=wo, b_o=stack("b_o"),
        ln2_g=stack("ln2_g"), ln2_b=stack("ln2_b"),
        w1=stack("w1").astype(jnp.bfloat16), b1=stack("b1"),
        w2=stack("w2").astype(jnp.bfloat16), b2=stack("b2"),
    )


# ---------------------------------------------------------------------------
# Deterministic parameter init (dropout=0.0 so it is ignored)
# ---------------------------------------------------------------------------
def init_params(key, depth, dim, heads, dim_head, mlp_dim):
    inner = heads * dim_head
    layers = []
    for d in range(depth):
        k = jax.random.split(jax.random.fold_in(key, d), 6)
        layers.append(dict(
            ln1_g=jnp.ones((1, dim), jnp.float32),
            ln1_b=jnp.zeros((1, dim), jnp.float32),
            w_qkv=jax.random.normal(k[0], (dim, 3 * inner), jnp.float32) / math.sqrt(dim),
            w_o=jax.random.normal(k[1], (inner, dim), jnp.float32) / math.sqrt(inner),
            b_o=0.02 * jax.random.normal(k[2], (1, dim), jnp.float32),
            ln2_g=jnp.ones((1, dim), jnp.float32),
            ln2_b=jnp.zeros((1, dim), jnp.float32),
            w1=jax.random.normal(k[3], (dim, mlp_dim), jnp.float32) / math.sqrt(dim),
            b1=0.02 * jax.random.normal(k[4], (1, mlp_dim), jnp.float32),
            w2=jax.random.normal(k[5], (mlp_dim, dim), jnp.float32) / math.sqrt(mlp_dim),
            b2=0.02 * jax.random.normal(jax.random.fold_in(k[5], 1), (1, dim), jnp.float32),
        ))
    return layers


# ---------------------------------------------------------------------------
# Pure-JAX reference (mirrors the PyTorch forward exactly, in f32)
# ---------------------------------------------------------------------------
def reference_transformer(x, layer_params, *, heads, dim_head):
    scale = dim_head ** (-0.5)
    inner = heads * dim_head

    def ln(y, g, b):
        mu = jnp.mean(y, -1, keepdims=True)
        var = jnp.mean((y - mu) ** 2, -1, keepdims=True)
        return (y - mu) / jnp.sqrt(var + 1e-5) * g + b

    for p in layer_params:
        xn = ln(x, p["ln1_g"], p["ln1_b"])
        qkv = xn @ p["w_qkv"]
        q, k, v = jnp.split(qkv, 3, axis=-1)

        def to_heads(t):
            b_, n_, _ = t.shape
            return t.reshape(b_, n_, heads, dim_head).transpose(0, 2, 1, 3)

        q, k, v = map(to_heads, (q, k, v))
        dots = jnp.einsum("bhid,bhjd->bhij", q, k) * scale
        attn = jax.nn.softmax(dots, axis=-1)
        o = jnp.einsum("bhij,bhjd->bhid", attn, v)
        o = o.transpose(0, 2, 1, 3).reshape(x.shape[0], x.shape[1], inner)
        x = o @ p["w_o"] + p["b_o"] + x

        xn2 = ln(x, p["ln2_g"], p["ln2_b"])
        h1 = jax.nn.gelu(xn2 @ p["w1"] + p["b1"], approximate=False)
        x = h1 @ p["w2"] + p["b2"] + x
    return x


if __name__ == "__main__":
    B, N, DIM = 2, 8, 32
    HEADS, DIM_HEAD, MLP_DIM, DEPTH = 4, 16, 64, 2

    key = jax.random.PRNGKey(0)
    kx, kp = jax.random.split(key)
    x = jax.random.normal(kx, (B, N, DIM), jnp.float32)
    params = init_params(kp, DEPTH, DIM, HEADS, DIM_HEAD, MLP_DIM)
    packed = pack_params(params, HEADS, DIM_HEAD)

    # batch_block=1 keeps two parallel batch blocks (fills both v7x TensorCores) at only 2x
    # weight traffic; on v5e/v6e a single fat block (batch_block=B) reads weights once.
    out = transformer(x, packed, batch_block=1)
    out = jax.block_until_ready(out)

    ref = reference_transformer(x, params, heads=HEADS, dim_head=DIM_HEAD)
    assert out.shape == x.shape
    assert bool(jnp.all(jnp.isfinite(out)))
    max_err = float(jnp.max(jnp.abs(out - ref)))
    assert max_err < 5e-2, f"kernel/reference mismatch: {max_err}"

    print("KERNEL_OK")
</pallas_src>

<mosaic_0001>
module attributes {stable_mosaic.version = 11 : i64} {
  func.func @transformer_kernel(%arg0: i32, %arg1: i32, %arg2: memref<1x8x32xf32, #tpu.memory_space<vmem>>, %arg3: memref<1x1x32xf32, #tpu.memory_space<vmem>>, %arg4: memref<1x1x32xf32, #tpu.memory_space<vmem>>, %arg5: memref<1x32x192xbf16, #tpu.memory_space<vmem>>, %arg6: memref<1x4x16x32xbf16, #tpu.memory_space<vmem>>, %arg7: memref<1x1x32xf32, #tpu.memory_space<vmem>>, %arg8: memref<1x1x32xf32, #tpu.memory_space<vmem>>, %arg9: memref<1x1x32xf32, #tpu.memory_space<vmem>>, %arg10: memref<1x32x64xbf16, #tpu.memory_space<vmem>>, %arg11: memref<1x1x64xf32, #tpu.memory_space<vmem>>, %arg12: memref<1x64x32xbf16, #tpu.memory_space<vmem>>, %arg13: memref<1x1x32xf32, #tpu.memory_space<vmem>>, %arg14: memref<1x8x32xf32, #tpu.memory_space<vmem>>, %arg15: memref<1x8x32xf32, #tpu.memory_space<vmem>>) attributes {dimension_semantics = [#tpu.dimension_semantics<parallel>, #tpu.dimension_semantics<arbitrary>], iteration_bounds = array<i64: 2, 2>, scalar_prefetch = 0 : i64, scratch_operands = 1 : i64, tpu.core_type = #tpu.core_type<tc>, window_params = [{transform_indices = @transform_0, window_bounds = array<i64: 1, 8, 32>}, {transform_indices = @transform_1, window_bounds = array<i64: 1, 1, 32>}, {transform_indices = @transform_2, window_bounds = array<i64: 1, 1, 32>}, {transform_indices = @transform_3, window_bounds = array<i64: 1, 32, 192>}, {transform_indices = @transform_4, window_bounds = array<i64: 1, 4, 16, 32>}, {transform_indices = @transform_5, window_bounds = array<i64: 1, 1, 32>}, {transform_indices = @transform_6, window_bounds = array<i64: 1, 1, 32>}, {transform_indices = @transform_7, window_bounds = array<i64: 1, 1, 32>}, {transform_indices = @transform_8, window_bounds = array<i64: 1, 32, 64>}, {transform_indices = @transform_9, window_bounds = array<i64: 1, 1, 64>}, {transform_indices = @transform_10, window_bounds = array<i64: 1, 64, 32>}, {transform_indices = @transform_11, window_bounds = array<i64: 1, 1, 32>}, {transform_indices = @transform_12, window_bounds = array<i64: 1, 8, 32>}]} {
    %c0_i32 = arith.constant 0 : i32
    %0 = arith.cmpi eq, %arg1, %c0_i32 : i32
    %1 = arith.extui %0 : i1 to i32
    %c0_i32_0 = arith.constant 0 : i32
    %2 = arith.cmpi ne, %1, %c0_i32_0 : i32
    scf.if %2 {
      %c0_78 = arith.constant 0 : index
      %c0_79 = arith.constant 0 : index
      %c0_80 = arith.constant 0 : index
      %223 = vector.load %arg2[%c0_78, %c0_79, %c0_80] : memref<1x8x32xf32, #tpu.memory_space<vmem>>, vector<1x8x32xf32>
      %c0_81 = arith.constant 0 : index
      %c0_82 = arith.constant 0 : index
      %c0_83 = arith.constant 0 : index
      %224 = vector.load %arg15[%c0_81, %c0_82, %c0_83] : memref<1x8x32xf32, #tpu.memory_space<vmem>>, vector<1x8x32xf32>
      tpu.vector_store %arg15[%c0_81, %c0_82, %c0_83], %223 {strides = array<i32>} : memref<1x8x32xf32, #tpu.memory_space<vmem>>, vector<1x8x32xf32>,
    } else {
    }
    %c0 = arith.constant 0 : index
    %c0_1 = arith.constant 0 : index
    %c0_2 = arith.constant 0 : index
    %3 = vector.load %arg15[%c0, %c0_1, %c0_2] : memref<1x8x32xf32, #tpu.memory_space<vmem>>, vector<1x8x32xf32>
    %c0_3 = arith.constant 0 : index
    %c0_4 = arith.constant 0 : index
    %c0_5 = arith.constant 0 : index
    %4 = vector.load %arg3[%c0_3, %c0_4, %c0_5] : memref<1x1x32xf32, #tpu.memory_space<vmem>>, vector<1x1x32xf32>
    %5 = vector.shape_cast %4 : vector<1x1x32xf32> to vector<1x32xf32>
    %c0_6 = arith.constant 0 : index
    %c0_7 = arith.constant 0 : index
    %c0_8 = arith.constant 0 : index
    %6 = vector.load %arg4[%c0_6, %c0_7, %c0_8] : memref<1x1x32xf32, #tpu.memory_space<vmem>>, vector<1x1x32xf32>
    %7 = vector.shape_cast %6 : vector<1x1x32xf32> to vector<1x32xf32>
    %cst = arith.constant dense<0.000000e+00> : vector<1x8xf32>
    %8 = vector.multi_reduction <add>, %3, %cst [2] : vector<1x8x32xf32> to vector<1x8xf32>
    %9 = vector.shape_cast %8 : vector<1x8xf32> to vector<1x8x1xf32>
    %cst_9 = arith.constant 3.200000e+01 : f32
    %10 = vector.broadcast %cst_9 : f32 to vector<1x8x1xf32>
    %11 = arith.divf %9, %10 : vector<1x8x1xf32>
    %12 = vector.broadcast %11 : vector<1x8x1xf32> to vector<1x8x32xf32>
    %13 = arith.subf %3, %12 : vector<1x8x32xf32>
    %14 = arith.mulf %13, %13 : vector<1x8x32xf32>
    %cst_10 = arith.constant dense<0.000000e+00> : vector<1x8xf32>
    %15 = vector.multi_reduction <add>, %14, %cst_10 [2] : vector<1x8x32xf32> to vector<1x8xf32>
    %16 = vector.shape_cast %15 : vector<1x8xf32> to vector<1x8x1xf32>
    %cst_11 = arith.constant 3.200000e+01 : f32
    %17 = vector.broadcast %cst_11 : f32 to vector<1x8x1xf32>
    %18 = arith.divf %16, %17 : vector<1x8x1xf32>
    %19 = vector.broadcast %11 : vector<1x8x1xf32> to vector<1x8x32xf32>
    %20 = arith.subf %3, %19 : vector<1x8x32xf32>
    %cst_12 = arith.constant 9.99999974E-6 : f32
    %21 = vector.broadcast %cst_12 : f32 to vector<1x8x1xf32>
    %22 = arith.addf %18, %21 : vector<1x8x1xf32>
    %23 = math.rsqrt %22 : vector<1x8x1xf32>
    %24 = vector.broadcast %23 : vector<1x8x1xf32> to vector<1x8x32xf32>
    %25 = arith.mulf %20, %24 : vector<1x8x32xf32>
    %26 = vector.shape_cast %5 : vector<1x32xf32> to vector<1x1x32xf32>
    %27 = vector.broadcast %26 : vector<1x1x32xf32> to vector<1x8x32xf32>
    %28 = arith.mulf %25, %27 : vector<1x8x32xf32>
    %29 = vector.shape_cast %7 : vector<1x32xf32> to vector<1x1x32xf32>
    %30 = vector.broadcast %29 : vector<1x1x32xf32> to vector<1x8x32xf32>
    %31 = arith.addf %28, %30 : vector<1x8x32xf32>
    %32 = arith.truncf %31 : vector<1x8x32xf32> to vector<1x8x32xbf16>
    %33 = vector.shape_cast %32 : vector<1x8x32xbf16> to vector<8x32xbf16>
    %c0_13 = arith.constant 0 : index
    %c0_14 = arith.constant 0 : index
    %c0_15 = arith.constant 0 : index
    %34 = vector.load %arg5[%c0_13, %c0_14, %c0_15] : memref<1x32x192xbf16, #tpu.memory_space<vmem>>, vector<1x32x192xbf16>
    %35 = vector.shape_cast %34 : vector<1x32x192xbf16> to vector<32x192xbf16>
    %cst_16 = arith.constant dense<0.000000e+00> : vector<8x192xf32>
    %36 = tpu.matmul %33, %35, %cst_16 {dimension_numbers = #tpu.dot_dimension_numbers<[1], [0], [0], [1], [0, 0, 1, 1], [], []>} : vector<8x32xbf16>, vector<32x192xbf16>, vector<8x192xf32> -> vector<8x192xf32>
    %c0_17 = arith.constant 0 : index
    %c0_18 = arith.constant 0 : index
    %c0_19 = arith.constant 0 : index
    %c0_20 = arith.constant 0 : index
    %37 = vector.load %arg6[%c0_17, %c0_18, %c0_19, %c0_20] : memref<1x4x16x32xbf16, #tpu.memory_space<vmem>>, vector<1x4x16x32xbf16>
    %38 = vector.shape_cast %37 : vector<1x4x16x32xbf16> to vector<4x16x32xbf16>
    %cst_21 = arith.constant 0.000000e+00 : f32
    %39 = vector.broadcast %cst_21 : f32 to vector<8x32xf32>
    %40 = vector.extract_strided_slice %36 {offsets = [0, 0], sizes = [8, 16], strides = [1, 1]} : vector<8x192xf32> to vector<8x16xf32>
    %41 = vector.shape_cast %40 : vector<8x16xf32> to vector<1x8x16xf32>
    %42 = arith.truncf %41 : vector<1x8x16xf32> to vector<1x8x16xbf16>
    %43 = vector.extract_strided_slice %36 {offsets = [0, 64], sizes = [8, 16], strides = [1, 1]} : vector<8x192xf32> to vector<8x16xf32>
    %44 = vector.shape_cast %43 : vector<8x16xf32> to vector<1x8x16xf32>
    %45 = arith.truncf %44 : vector<1x8x16xf32> to vector<1x8x16xbf16>
    %46 = vector.extract_strided_slice %36 {offsets = [0, 128], sizes = [8, 16], strides = [1, 1]} : vector<8x192xf32> to vector<8x16xf32>
    %47 = vector.shape_cast %46 : vector<8x16xf32> to vector<1x8x16xf32>
    %48 = arith.truncf %47 : vector<1x8x16xf32> to vector<1x8x16xbf16>
    %cst_22 = arith.constant dense<0.000000e+00> : vector<1x8x8xf32>
    %49 = tpu.matmul %42, %45, %cst_22 {dimension_numbers = #tpu.dot_dimension_numbers<[2], [2], [1], [1], [0, 0, 0, 1, 1, 1], [0], [0]>} : vector<1x8x16xbf16>, vector<1x8x16xbf16>, vector<1x8x8xf32> -> vector<1x8x8xf32>
    %cst_23 = arith.constant dense<0xFF800000> : vector<1x8xf32>
    %50 = vector.multi_reduction <maximumf>, %49, %cst_23 [2] : vector<1x8x8xf32> to vector<1x8xf32>
    %51 = vector.shape_cast %50 : vector<1x8xf32> to vector<1x8x1xf32>
    %52 = vector.broadcast %51 : vector<1x8x1xf32> to vector<1x8x8xf32>
    %53 = arith.subf %49, %52 : vector<1x8x8xf32>
    %54 = math.exp %53 : vector<1x8x8xf32>
    %cst_24 = arith.constant dense<0.000000e+00> : vector<1x8xf32>
    %55 = vector.multi_reduction <add>, %54, %cst_24 [2] : vector<1x8x8xf32> to vector<1x8xf32>
    %56 = vector.shape_cast %55 : vector<1x8xf32> to vector<1x8x1xf32>
    %57 = arith.truncf %54 : vector<1x8x8xf32> to vector<1x8x8xbf16>
    %cst_25 = arith.constant dense<0.000000e+00> : vector<1x8x16xf32>
    %58 = tpu.matmul %57, %48, %cst_25 {dimension_numbers = #tpu.dot_dimension_numbers<[2], [1], [1], [2], [0, 0, 0, 1, 1, 2], [0], [0]>} : vector<1x8x8xbf16>, vector<1x8x16xbf16>, vector<1x8x16xf32> -> vector<1x8x16xf32>
    %59 = tpu.reciprocal %56 {approx = true} : vector<1x8x1xf32> -> vector<1x8x1xf32>
    %60 = vector.broadcast %59 : vector<1x8x1xf32> to vector<1x8x16xf32>
    %61 = arith.mulf %58, %60 : vector<1x8x16xf32>
    %62 = vector.shape_cast %61 : vector<1x8x16xf32> to vector<8x16xf32>
    %63 = arith.truncf %62 : vector<8x16xf32> to vector<8x16xbf16>
    %64 = vector.extract_strided_slice %38 {offsets = [0, 0, 0], sizes = [1, 16, 32], strides = [1, 1, 1]} : vector<4x16x32xbf16> to vector<1x16x32xbf16>
    %65 = vector.shape_cast %64 : vector<1x16x32xbf16> to vector<16x32xbf16>
    %cst_26 = arith.constant dense<0.000000e+00> : vector<8x32xf32>
    %66 = tpu.matmul %63, %65, %cst_26 {dimension_numbers = #tpu.dot_dimension_numbers<[1], [0], [0], [1], [0, 0, 1, 1], [], []>} : vector<8x16xbf16>, vector<16x32xbf16>, vector<8x32xf32> -> vector<8x32xf32>
    %67 = arith.addf %39, %66 : vector<8x32xf32>
    %68 = vector.extract_strided_slice %36 {offsets = [0, 16], sizes = [8, 16], strides = [1, 1]} : vector<8x192xf32> to vector<8x16xf32>
    %69 = vector.shape_cast %68 : vector<8x16xf32> to vector<1x8x16xf32>
    %70 = arith.truncf %69 : vector<1x8x16xf32> to vector<1x8x16xbf16>
    %71 = vector.extract_strided_slice %36 {offsets = [0, 80], sizes = [8, 16], strides = [1, 1]} : vector<8x192xf32> to vector<8x16xf32>
    %72 = vector.shape_cast %71 : vector<8x16xf32> to vector<1x8x16xf32>
    %73 = arith.truncf %72 : vector<1x8x16xf32> to vector<1x8x16xbf16>
    %74 = vector.extract_strided_slice %36 {offsets = [0, 144], sizes = [8, 16], strides = [1, 1]} : vector<8x192xf32> to vector<8x16xf32>
    %75 = vector.shape_cast %74 : vector<8x16xf32> to vector<1x8x16xf32>
    %76 = arith.truncf %75 : vector<1x8x16xf32> to vector<1x8x16xbf16>
    %cst_27 = arith.constant dense<0.000000e+00> : vector<1x8x8xf32>
    %77 = tpu.matmul %70, %73, %cst_27 {dimension_numbers = #tpu.dot_dimension_numbers<[2], [2], [1], [1], [0, 0, 0, 1, 1, 1], [0], [0]>} : vector<1x8x16xbf16>, vector<1x8x16xbf16>, vector<1x8x8xf32> -> vector<1x8x8xf32>
    %cst_28 = arith.constant dense<0xFF800000> : vector<1x8xf32>
    %78 = vector.multi_reduction <maximumf>, %77, %cst_28 [2] : vector<1x8x8xf32> to vector<1x8xf32>
    %79 = vector.shape_cast %78 : vector<1x8xf32> to vector<1x8x1xf32>
    %80 = vector.broadcast %79 : vector<1x8x1xf32> to vector<1x8x8xf32>
    %81 = arith.subf %77, %80 : vector<1x8x8xf32>
    %82 = math.exp %81 : vector<1x8x8xf32>
    %cst_29 = arith.constant dense<0.000000e+00> : vector<1x8xf32>
    %83 = vector.multi_reduction <add>, %82, %cst_29 [2] : vector<1x8x8xf32> to vector<1x8xf32>
    %84 = vector.shape_cast %83 : vector<1x8xf32> to vector<1x8x1xf32>
    %85 = arith.truncf %82 : vector<1x8x8xf32> to vector<1x8x8xbf16>
    %cst_30 = arith.constant dense<0.000000e+00> : vector<1x8x16xf32>
    %86 = tpu.matmul %85, %76, %cst_30 {dimension_numbers = #tpu.dot_dimension_numbers<[2], [1], [1], [2], [0, 0, 0, 1, 1, 2], [0], [0]>} : vector<1x8x8xbf16>, vector<1x8x16xbf16>, vector<1x8x16xf32> -> vector<1x8x16xf32>
    %87 = tpu.reciprocal %84 {approx = true} : vector<1x8x1xf32> -> vector<1x8x1xf32>
    %88 = vector.broadcast %87 : vector<1x8x1xf32> to vector<1x8x16xf32>
    %89 = arith.mulf %86, %88 : vector<1x8x16xf32>
    %90 = vector.shape_cast %89 : vector<1x8x16xf32> to vector<8x16xf32>
    %91 = arith.truncf %90 : vector<8x16xf32> to vector<8x16xbf16>
    %92 = vector.extract_strided_slice %38 {offsets = [1, 0, 0], sizes = [1, 16, 32], strides = [1, 1, 1]} : vector<4x16x32xbf16> to vector<1x16x32xbf16>
    %93 = vector.shape_cast %92 : vector<1x16x32xbf16> to vector<16x32xbf16>
    %cst_31 = arith.constant dense<0.000000e+00> : vector<8x32xf32>
    %94 = tpu.matmul %91, %93, %cst_31 {dimension_numbers = #tpu.dot_dimension_numbers<[1], [0], [0], [1], [0, 0, 1, 1], [], []>} : vector<8x16xbf16>, vector<16x32xbf16>, vector<8x32xf32> -> vector<8x32xf32>
    %95 = arith.addf %67, %94 : vector<8x32xf32>
    %96 = vector.extract_strided_slice %36 {offsets = [0, 32], sizes = [8, 16], strides = [1, 1]} : vector<8x192xf32> to vector<8x16xf32>
    %97 = vector.shape_cast %96 : vector<8x16xf32> to vector<1x8x16xf32>
    %98 = arith.truncf %97 : vector<1x8x16xf32> to vector<1x8x16xbf16>
    %99 = vector.extract_strided_slice %36 {offsets = [0, 96], sizes = [8, 16], strides = [1, 1]} : vector<8x192xf32> to vector<8x16xf32>
    %100 = vector.shape_cast %99 : vector<8x16xf32> to vector<1x8x16xf32>
    %101 = arith.truncf %100 : vector<1x8x16xf32> to vector<1x8x16xbf16>
    %102 = vector.extract_strided_slice %36 {offsets = [0, 160], sizes = [8, 16], strides = [1, 1]} : vector<8x192xf32> to vector<8x16xf32>
    %103 = vector.shape_cast %102 : vector<8x16xf32> to vector<1x8x16xf32>
    %104 = arith.truncf %103 : vector<1x8x16xf32> to vector<1x8x16xbf16>
    %cst_32 = arith.constant dense<0.000000e+00> : vector<1x8x8xf32>
    %105 = tpu.matmul %98, %101, %cst_32 {dimension_numbers = #tpu.dot_dimension_numbers<[2], [2], [1], [1], [0, 0, 0, 1, 1, 1], [0], [0]>} : vector<1x8x16xbf16>, vector<1x8x16xbf16>, vector<1x8x8xf32> -> vector<1x8x8xf32>
    %cst_33 = arith.constant dense<0xFF800000> : vector<1x8xf32>
    %106 = vector.multi_reduction <maximumf>, %105, %cst_33 [2] : vector<1x8x8xf32> to vector<1x8xf32>
    %107 = vector.shape_cast %106 : vector<1x8xf32> to vector<1x8x1xf32>
    %108 = vector.broadcast %107 : vector<1x8x1xf32> to vector<1x8x8xf32>
    %109 = arith.subf %105, %108 : vector<1x8x8xf32>
    %110 = math.exp %109 : vector<1x8x8xf32>
    %cst_34 = arith.constant dense<0.000000e+00> : vector<1x8xf32>
    %111 = vector.multi_reduction <add>, %110, %cst_34 [2] : vector<1x8x8xf32> to vector<1x8xf32>
    %112 = vector.shape_cast %111 : vector<1x8xf32> to vector<1x8x1xf32>
    %113 = arith.truncf %110 : vector<1x8x8xf32> to vector<1x8x8xbf16>
    %cst_35 = arith.constant dense<0.000000e+00> : vector<1x8x16xf32>
    %114 = tpu.matmul %113, %104, %cst_35 {dimension_numbers = #tpu.dot_dimension_numbers<[2], [1], [1], [2], [0, 0, 0, 1, 1, 2], [0], [0]>} : vector<1x8x8xbf16>, vector<1x8x16xbf16>, vector<1x8x16xf32> -> vector<1x8x16xf32>
    %115 = tpu.reciprocal %112 {approx = true} : vector<1x8x1xf32> -> vector<1x8x1xf32>
    %116 = vector.broadcast %115 : vector<1x8x1xf32> to vector<1x8x16xf32>
    %117 = arith.mulf %114, %116 : vector<1x8x16xf32>
    %118 = vector.shape_cast %117 : vector<1x8x16xf32> to vector<8x16xf32>
    %119 = arith.truncf %118 : vector<8x16xf32> to vector<8x16xbf16>
    %120 = vector.extract_strided_slice %38 {offsets = [2, 0, 0], sizes = [1, 16, 32], strides = [1, 1, 1]} : vector<4x16x32xbf16> to vector<1x16x32xbf16>
    %121 = vector.shape_cast %120 : vector<1x16x32xbf16> to vector<16x32xbf16>
    %cst_36 = arith.constant dense<0.000000e+00> : vector<8x32xf32>
    %122 = tpu.matmul %119, %121, %cst_36 {dimension_numbers = #tpu.dot_dimension_numbers<[1], [0], [0], [1], [0, 0, 1, 1], [], []>} : vector<8x16xbf16>, vector<16x32xbf16>, vector<8x32xf32> -> vector<8x32xf32>
    %123 = arith.addf %95, %122 : vector<8x32xf32>
    %124 = vector.extract_strided_slice %36 {offsets = [0, 48], sizes = [8, 16], strides = [1, 1]} : vector<8x192xf32> to vector<8x16xf32>
    %125 = vector.shape_cast %124 : vector<8x16xf32> to vector<1x8x16xf32>
    %126 = arith.truncf %125 : vector<1x8x16xf32> to vector<1x8x16xbf16>
    %127 = vector.extract_strided_slice %36 {offsets = [0, 112], sizes = [8, 16], strides = [1, 1]} : vector<8x192xf32> to vector<8x16xf32>
    %128 = vector.shape_cast %127 : vector<8x16xf32> to vector<1x8x16xf32>
    %129 = arith.truncf %128 : vector<1x8x16xf32> to vector<1x8x16xbf16>
    %130 = vector.extract_strided_slice %36 {offsets = [0, 176], sizes = [8, 16], strides = [1, 1]} : vector<8x192xf32> to vector<8x16xf32>
    %131 = vector.shape_cast %130 : vector<8x16xf32> to vector<1x8x16xf32>
    %132 = arith.truncf %131 : vector<1x8x16xf32> to vector<1x8x16xbf16>
    %cst_37 = arith.constant dense<0.000000e+00> : vector<1x8x8xf32>
    %133 = tpu.matmul %126, %129, %cst_37 {dimension_numbers = #tpu.dot_dimension_numbers<[2], [2], [1], [1], [0, 0, 0, 1, 1, 1], [0], [0]>} : vector<1x8x16xbf16>, vector<1x8x16xbf16>, vector<1x8x8xf32> -> vector<1x8x8xf32>
    %cst_38 = arith.constant dense<0xFF800000> : vector<1x8xf32>
    %134 = vector.multi_reduction <maximumf>, %133, %cst_38 [2] : vector<1x8x8xf32> to vector<1x8xf32>
    %135 = vector.shape_cast %134 : vector<1x8xf32> to vector<1x8x1xf32>
    %136 = vector.broadcast %135 : vector<1x8x1xf32> to vector<1x8x8xf32>
    %137 = arith.subf %133, %136 : vector<1x8x8xf32>
    %138 = math.exp %137 : vector<1x8x8xf32>
    %cst_39 = arith.constant dense<0.000000e+00> : vector<1x8xf32>
    %139 = vector.multi_reduction <add>, %138, %cst_39 [2] : vector<1x8x8xf32> to vector<1x8xf32>
    %140 = vector.shape_cast %139 : vector<1x8xf32> to vector<1x8x1xf32>
    %141 = arith.truncf %138 : vector<1x8x8xf32> to vector<1x8x8xbf16>
    %cst_40 = arith.constant dense<0.000000e+00> : vector<1x8x16xf32>
    %142 = tpu.matmul %141, %132, %cst_40 {dimension_numbers = #tpu.dot_dimension_numbers<[2], [1], [1], [2], [0, 0, 0, 1, 1, 2], [0], [0]>} : vector<1x8x8xbf16>, vector<1x8x16xbf16>, vector<1x8x16xf32> -> vector<1x8x16xf32>
    %143 = tpu.reciprocal %140 {approx = true} : vector<1x8x1xf32> -> vector<1x8x1xf32>
    %144 = vector.broadcast %143 : vector<1x8x1xf32> to vector<1x8x16xf32>
    %145 = arith.mulf %142, %144 : vector<1x8x16xf32>
    %146 = vector.shape_cast %145 : vector<1x8x16xf32> to vector<8x16xf32>
    %147 = arith.truncf %146 : vector<8x16xf32> to vector<8x16xbf16>
    %148 = vector.extract_strided_slice %38 {offsets = [3, 0, 0], sizes = [1, 16, 32], strides = [1, 1, 1]} : vector<4x16x32xbf16> to vector<1x16x32xbf16>
    %149 = vector.shape_cast %148 : vector<1x16x32xbf16> to vector<16x32xbf16>
    %cst_41 = arith.constant dense<0.000000e+00> : vector<8x32xf32>
    %150 = tpu.matmul %147, %149, %cst_41 {dimension_numbers = #tpu.dot_dimension_numbers<[1], [0], [0], [1], [0, 0, 1, 1], [], []>} : vector<8x16xbf16>, vector<16x32xbf16>, vector<8x32xf32> -> vector<8x32xf32>
    %151 = arith.addf %123, %150 : vector<8x32xf32>
    %152 = vector.shape_cast %151 : vector<8x32xf32> to vector<1x8x32xf32>
    %153 = arith.addf %3, %152 : vector<1x8x32xf32>
    %c0_42 = arith.constant 0 : index
    %c0_43 = arith.constant 0 : index
    %c0_44 = arith.constant 0 : index
    %154 = vector.load %arg7[%c0_42, %c0_43, %c0_44] : memref<1x1x32xf32, #tpu.memory_space<vmem>>, vector<1x1x32xf32>
    %155 = vector.shape_cast %154 : vector<1x1x32xf32> to vector<1x32xf32>
    %156 = vector.shape_cast %155 : vector<1x32xf32> to vector<1x1x32xf32>
    %157 = vector.broadcast %156 : vector<1x1x32xf32> to vector<1x8x32xf32>
    %158 = arith.addf %153, %157 : vector<1x8x32xf32>
    %c0_45 = arith.constant 0 : index
    %c0_46 = arith.constant 0 : index
    %c0_47 = arith.constant 0 : index
    %159 = vector.load %arg8[%c0_45, %c0_46, %c0_47] : memref<1x1x32xf32, #tpu.memory_space<vmem>>, vector<1x1x32xf32>
    %160 = vector.shape_cast %159 : vector<1x1x32xf32> to vector<1x32xf32>
    %c0_48 = arith.constant 0 : index
    %c0_49 = arith.constant 0 : index
    %c0_50 = arith.constant 0 : index
    %161 = vector.load %arg9[%c0_48, %c0_49, %c0_50] : memref<1x1x32xf32, #tpu.memory_space<vmem>>, vector<1x1x32xf32>
    %162 = vector.shape_cast %161 : vector<1x1x32xf32> to vector<1x32xf32>
    %cst_51 = arith.constant dense<0.000000e+00> : vector<1x8xf32>
    %163 = vector.multi_reduction <add>, %158, %cst_51 [2] : vector<1x8x32xf32> to vector<1x8xf32>
    %164 = vector.shape_cast %163 : vector<1x8xf32> to vector<1x8x1xf32>
    %cst_52 = arith.constant 3.200000e+01 : f32
    %165 = vector.broadcast %cst_52 : f32 to vector<1x8x1xf32>
    %166 = arith.divf %164, %165 : vector<1x8x1xf32>
    %167 = vector.broadcast %166 : vector<1x8x1xf32> to vector<1x8x32xf32>
    %168 = arith.subf %158, %167 : vector<1x8x32xf32>
    %169 = arith.mulf %168, %168 : vector<1x8x32xf32>
    %cst_53 = arith.constant dense<0.000000e+00> : vector<1x8xf32>
    %170 = vector.multi_reduction <add>, %169, %cst_53 [2] : vector<1x8x32xf32> to vector<1x8xf32>
    %171 = vector.shape_cast %170 : vector<1x8xf32> to vector<1x8x1xf32>
    %cst_54 = arith.constant 3.200000e+01 : f32
    %172 = vector.broadcast %cst_54 : f32 to vector<1x8x1xf32>
    %173 = arith.divf %171, %172 : vector<1x8x1xf32>
    %174 = vector.broadcast %166 : vector<1x8x1xf32> to vector<1x8x32xf32>
    %175 = arith.subf %158, %174 : vector<1x8x32xf32>
    %cst_55 = arith.constant 9.99999974E-6 : f32
    %176 = vector.broadcast %cst_55 : f32 to vector<1x8x1xf32>
    %177 = arith.addf %173, %176 : vector<1x8x1xf32>
    %178 = math.rsqrt %177 : vector<1x8x1xf32>
    %179 = vector.broadcast %178 : vector<1x8x1xf32> to vector<1x8x32xf32>
    %180 = arith.mulf %175, %179 : vector<1x8x32xf32>
    %181 = vector.shape_cast %160 : vector<1x32xf32> to vector<1x1x32xf32>
    %182 = vector.broadcast %181 : vector<1x1x32xf32> to vector<1x8x32xf32>
    %183 = arith.mulf %180, %182 : vector<1x8x32xf32>
    %184 = vector.shape_cast %162 : vector<1x32xf32> to vector<1x1x32xf32>
    %185 = vector.broadcast %184 : vector<1x1x32xf32> to vector<1x8x32xf32>
    %186 = arith.addf %183, %185 : vector<1x8x32xf32>
    %187 = arith.truncf %186 : vector<1x8x32xf32> to vector<1x8x32xbf16>
    %188 = vector.shape_cast %187 : vector<1x8x32xbf16> to vector<8x32xbf16>
    %c0_56 = arith.constant 0 : index
    %c0_57 = arith.constant 0 : index
    %c0_58 = arith.constant 0 : index
    %189 = vector.load %arg10[%c0_56, %c0_57, %c0_58] : memref<1x32x64xbf16, #tpu.memory_space<vmem>>, vector<1x32x64xbf16>
    %190 = vector.shape_cast %189 : vector<1x32x64xbf16> to vector<32x64xbf16>
    %cst_59 = arith.constant dense<0.000000e+00> : vector<8x64xf32>
    %191 = tpu.matmul %188, %190, %cst_59 {dimension_numbers = #tpu.dot_dimension_numbers<[1], [0], [0], [1], [0, 0, 1, 1], [], []>} : vector<8x32xbf16>, vector<32x64xbf16>, vector<8x64xf32> -> vector<8x64xf32>
    %c0_60 = arith.constant 0 : index
    %c0_61 = arith.constant 0 : index
    %c0_62 = arith.constant 0 : index
    %192 = vector.load %arg11[%c0_60, %c0_61, %c0_62] : memref<1x1x64xf32, #tpu.memory_space<vmem>>, vector<1x1x64xf32>
    %193 = vector.shape_cast %192 : vector<1x1x64xf32> to vector<1x64xf32>
    %194 = vector.broadcast %193 : vector<1x64xf32> to vector<8x64xf32>
    %195 = arith.addf %191, %194 : vector<8x64xf32>
    %cst_63 = arith.constant 5.000000e-01 : f32
    %196 = vector.broadcast %cst_63 : f32 to vector<8x64xf32>
    %197 = arith.mulf %196, %195 : vector<8x64xf32>
    %198 = arith.mulf %195, %195 : vector<8x64xf32>
    %199 = arith.mulf %198, %195 : vector<8x64xf32>
    %cst_64 = arith.constant 4.471500e-02 : f32
    %200 = vector.broadcast %cst_64 : f32 to vector<8x64xf32>
    %201 = arith.mulf %200, %199 : vector<8x64xf32>
    %202 = arith.addf %195, %201 : vector<8x64xf32>
    %cst_65 = arith.constant 0.797884583 : f32
    %203 = vector.broadcast %cst_65 : f32 to vector<8x64xf32>
    %204 = arith.mulf %203, %202 : vector<8x64xf32>
    %205 = math.tanh %204 : vector<8x64xf32>
    %cst_66 = arith.constant 1.000000e+00 : f32
    %206 = vector.broadcast %cst_66 : f32 to vector<8x64xf32>
    %207 = arith.addf %206, %205 : vector<8x64xf32>
    %208 = arith.mulf %197, %207 : vector<8x64xf32>
    %209 = arith.truncf %208 : vector<8x64xf32> to vector<8x64xbf16>
    %c0_67 = arith.constant 0 : index
    %c0_68 = arith.constant 0 : index
    %c0_69 = arith.constant 0 : index
    %210 = vector.load %arg12[%c0_67, %c0_68, %c0_69] : memref<1x64x32xbf16, #tpu.memory_space<vmem>>, vector<1x64x32xbf16>
    %211 = vector.shape_cast %210 : vector<1x64x32xbf16> to vector<64x32xbf16>
    %cst_70 = arith.constant dense<0.000000e+00> : vector<8x32xf32>
    %212 = tpu.matmul %209, %211, %cst_70 {dimension_numbers = #tpu.dot_dimension_numbers<[1], [0], [0], [1], [0, 0, 1, 1], [], []>} : vector<8x64xbf16>, vector<64x32xbf16>, vector<8x32xf32> -> vector<8x32xf32>
    %c0_71 = arith.constant 0 : index
    %c0_72 = arith.constant 0 : index
    %c0_73 = arith.constant 0 : index
    %213 = vector.load %arg13[%c0_71, %c0_72, %c0_73] : memref<1x1x32xf32, #tpu.memory_space<vmem>>, vector<1x1x32xf32>
    %214 = vector.shape_cast %213 : vector<1x1x32xf32> to vector<1x32xf32>
    %215 = vector.broadcast %214 : vector<1x32xf32> to vector<8x32xf32>
    %216 = arith.addf %212, %215 : vector<8x32xf32>
    %217 = vector.shape_cast %216 : vector<8x32xf32> to vector<1x8x32xf32>
    %218 = arith.addf %158, %217 : vector<1x8x32xf32>
    %c0_74 = arith.constant 0 : index
    %c0_75 = arith.constant 0 : index
    %c0_76 = arith.constant 0 : index
    %219 = vector.load %arg15[%c0_74, %c0_75, %c0_76] : memref<1x8x32xf32, #tpu.memory_space<vmem>>, vector<1x8x32xf32>
    tpu.vector_store %arg15[%c0_74, %c0_75, %c0_76], %218 {strides = array<i32>} : memref<1x8x32xf32, #tpu.memory_space<vmem>>, vector<1x8x32xf32>,
    %c1_i32 = arith.constant 1 : i32
    %220 = arith.cmpi eq, %arg1, %c1_i32 : i32
    %221 = arith.extui %220 : i1 to i32
    %c0_i32_77 = arith.constant 0 : i32
    %222 = arith.cmpi ne, %221, %c0_i32_77 : i32
    scf.if %222 {
      %c0_78 = arith.constant 0 : index
      %c0_79 = arith.constant 0 : index
      %c0_80 = arith.constant 0 : index
      %223 = vector.load %arg14[%c0_78, %c0_79, %c0_80] : memref<1x8x32xf32, #tpu.memory_space<vmem>>, vector<1x8x32xf32>
      tpu.vector_store %arg14[%c0_78, %c0_79, %c0_80], %218 {strides = array<i32>} : memref<1x8x32xf32, #tpu.memory_space<vmem>>, vector<1x8x32xf32>,
    } else {
    }
    return
  }
  func.func @transform_0(%arg0: i32, %arg1: i32) -> (i32, i32, i32) {
    %c0_i32 = arith.constant 0 : i32
    %c0_i32_0 = arith.constant 0 : i32
    %c0_i32_1 = arith.constant 0 : i32
    return %arg0, %c0_i32, %c0_i32_0 : i32, i32, i32
  }
  func.func @transform_1(%arg0: i32, %arg1: i32) -> (i32, i32, i32) {
    %c0_i32 = arith.constant 0 : i32
    %c0_i32_0 = arith.constant 0 : i32
    %c0_i32_1 = arith.constant 0 : i32
    return %arg1, %c0_i32, %c0_i32_0 : i32, i32, i32
  }
  func.func @transform_2(%arg0: i32, %arg1: i32) -> (i32, i32, i32) {
    %c0_i32 = arith.constant 0 : i32
    %c0_i32_0 = arith.constant 0 : i32
    %c0_i32_1 = arith.constant 0 : i32
    return %arg1, %c0_i32, %c0_i32_0 : i32, i32, i32
  }
  func.func @transform_3(%arg0: i32, %arg1: i32) -> (i32, i32, i32) {
    %c0_i32 = arith.constant 0 : i32
    %c0_i32_0 = arith.constant 0 : i32
    %c0_i32_1 = arith.constant 0 : i32
    return %arg1, %c0_i32, %c0_i32_0 : i32, i32, i32
  }
  func.func @transform_4(%arg0: i32, %arg1: i32) -> (i32, i32, i32, i32) {
    %c0_i32 = arith.constant 0 : i32
    %c0_i32_0 = arith.constant 0 : i32
    %c0_i32_1 = arith.constant 0 : i32
    %c0_i32_2 = arith.constant 0 : i32
    return %arg1, %c0_i32, %c0_i32_0, %c0_i32_1 : i32, i32, i32, i32
  }
  func.func @transform_5(%arg0: i32, %arg1: i32) -> (i32, i32, i32) {
    %c0_i32 = arith.constant 0 : i32
    %c0_i32_0 = arith.constant 0 : i32
    %c0_i32_1 = arith.constant 0 : i32
    return %arg1, %c0_i32, %c0_i32_0 : i32, i32, i32
  }
  func.func @transform_6(%arg0: i32, %arg1: i32) -> (i32, i32, i32) {
    %c0_i32 = arith.constant 0 : i32
    %c0_i32_0 = arith.constant 0 : i32
    %c0_i32_1 = arith.constant 0 : i32
    return %arg1, %c0_i32, %c0_i32_0 : i32, i32, i32
  }
  func.func @transform_7(%arg0: i32, %arg1: i32) -> (i32, i32, i32) {
    %c0_i32 = arith.constant 0 : i32
    %c0_i32_0 = arith.constant 0 : i32
    %c0_i32_1 = arith.constant 0 : i32
    return %arg1, %c0_i32, %c0_i32_0 : i32, i32, i32
  }
  func.func @transform_8(%arg0: i32, %arg1: i32) -> (i32, i32, i32) {
    %c0_i32 = arith.constant 0 : i32
    %c0_i32_0 = arith.constant 0 : i32
    %c0_i32_1 = arith.constant 0 : i32
    return %arg1, %c0_i32, %c0_i32_0 : i32, i32, i32
  }
  func.func @transform_9(%arg0: i32, %arg1: i32) -> (i32, i32, i32) {
    %c0_i32 = arith.constant 0 : i32
    %c0_i32_0 = arith.constant 0 : i32
    %c0_i32_1 = arith.constant 0 : i32
    return %arg1, %c0_i32, %c0_i32_0 : i32, i32, i32
  }
  func.func @transform_10(%arg0: i32, %arg1: i32) -> (i32, i32, i32) {
    %c0_i32 = arith.constant 0 : i32
    %c0_i32_0 = arith.constant 0 : i32
    %c0_i32_1 = arith.constant 0 : i32
    return %arg1, %c0_i32, %c0_i32_0 : i32, i32, i32
  }
  func.func @transform_11(%arg0: i32, %arg1: i32) -> (i32, i32, i32) {
    %c0_i32 = arith.constant 0 : i32
    %c0_i32_0 = arith.constant 0 : i32
    %c0_i32_1 = arith.constant 0 : i32
    return %arg1, %c0_i32, %c0_i32_0 : i32, i32, i32
  }
  func.func @transform_12(%arg0: i32, %arg1: i32) -> (i32, i32, i32) {
    %c0_i32 = arith.constant 0 : i32
    %c0_i32_0 = arith.constant 0 : i32
    %c0_i32_1 = arith.constant 0 : i32
    return %arg0, %c0_i32, %c0_i32_0 : i32, i32, i32
  }
}

</mosaic_0001>

<bundles_post_ra>
// kernel: tpu_custom_call.1
= control target key start
LH: loop header
LB: loop body
LE: loop exit
PB: predicated region body
PF: predicated region fallthrough
CT: control target
= control target key end

     0   :  { %s3332_s0 = inlined_call_operand.hbm [shape: f32[2,8,32], index: 0, kind: input, shape index: {}]   ;;  %s3333_s1 = inlined_call_operand.vmem [shape: f32[2,1,32], index: 1, kind: input, shape index: {}]   ;;  %s3334_s2 = inlined_call_operand.vmem [shape: f32[2,1,32], index: 2, kind: input, shape index: {}]   ;;  %s3335_s3 = inlined_call_operand.vmem [shape: bf16[2,32,192], index: 3, kind: input, shape index: {}]   ;;  %s3336_s4 = inlined_call_operand.hbm [shape: bf16[2,4,16,32], index: 4, kind: input, shape index: {}]   ;;  %s3337_s5 = inlined_call_operand.hbm [shape: f32[2,1,32], index: 5, kind: input, shape index: {}]   ;;  %s3338_s6 = inlined_call_operand.hbm [shape: f32[2,1,32], index: 6, kind: input, shape index: {}]   ;;  %s3339_s7 = inlined_call_operand.hbm [shape: f32[2,1,32], index: 7, kind: input, shape index: {}]   ;;  %s3340_s8 = inlined_call_operand.vmem [shape: bf16[2,32,64], index: 8, kind: input, shape index: {}]   ;;  %s3341_s9 = inlined_call_operand.hbm [shape: f32[2,1,64], index: 9, kind: input, shape index: {}]   ;;  %s3342_s10 = inlined_call_operand.vmem [shape: bf16[2,64,32], index: 10, kind: input, shape index: {}]   ;;  %s3343_s11 = inlined_call_operand.vmem [shape: f32[2,1,32], index: 11, kind: input, shape index: {}]   ;;  %s3344_s12 = inlined_call_operand.hbm [shape: f32[2,8,32], index: 12, kind: output, shape index: {}]  }
   0x1   :  { %3365 = sst [smem:[#allocation33_spill]] %s3332_s0 }
   0x2   :  { %3366 = sst [smem:[#allocation34_spill]] %s3333_s1 }
   0x3   :  { %3367 = sst [smem:[#allocation35_spill]] %s3334_s2 }
   0x4   :  { %3368 = sst [smem:[#allocation36_spill]] %s3335_s3 }
   0x5   :  { %3369 = sst [smem:[#allocation37_spill]] %s3336_s4 }
   0x6   :  { %3370 = sst [smem:[#allocation38_spill]] %s3337_s5 }
   0x7   :  { %3371 = sst [smem:[#allocation39_spill]] %s3338_s6 }
   0x8   :  { %3372 = sst [smem:[#allocation40_spill]] %s3339_s7 }
   0x9   :  { %3373 = sst [smem:[#allocation41_spill]] %s3340_s8 }
   0xa   :  { %3374 = sst [smem:[#allocation42_spill]] %s3342_s10 }
   0xb   :  { %3375 = sst [smem:[#allocation43_spill]] %s3343_s11 }
   0xc   :  { %3376 = sst [smem:[#allocation44_spill]] %s3344_s12 }
   0xd   :  { %17 = vsyncpa [#allocation4], 0 }
   0xe   :  { %19 = vsyncpa [#allocation4 + $0x1], 0 }
   0xf   :  { %20 = vsyncpa [#allocation7], 0 }
  0x10   :  { %22 = vsyncpa [#allocation7 + $0x1], 0 }
  0x11   :  { %23 = vsyncpa [#allocation10], 0 }
  0x12   :  { %25 = vsyncpa [#allocation10 + $0x1], 0 }
  0x13   :  { %26 = vsyncpa [#allocation13], 0 }
  0x14   :  { %28 = vsyncpa [#allocation13 + $0x1], 0 }
  0x15   :  { %29 = vsyncpa [#allocation5], 0 }
  0x16   :  { %31 = vsyncpa [#allocation5 + $0x1], 0  ;;  %s2705_s21 = smov 0   ;;  %s2707_s22 = smov 0  }
  0x17   :  { %s2709_s23 = smov 0   ;;  %s2711_s24 = smov 0  }
  0x18   :  { %s2713_s25 = smov 0   ;;  %s2715_s26 = smov 0  }
  0x19   :  { %s2717_s27 = smov 0   ;;  %s2719_s28 = smov 0  }
  0x1a   :  { %s2721_s29 = smov 0   ;;  %s2723_s30 = smov 0  }
  0x1b   :  { %s2725_s13 = smov 0  }
  0x1c LB: > { %3377 = sst [smem:[#allocation20_spill]] %s2587_s23  ;;  %p3348_p0 = scmp.eq.s32.totalorder %s2619_s13, 0  ;;  %s2619_s13 = sphi %s2725_s13, %s37_s13   ;;  %s2615_s30 = sphi %s2723_s30, %s3449_s30   ;;  %s2611_s29 = sphi %s2721_s29, %s3448_s29   ;;  %s2607_s28 = sphi %s2719_s28, %s3454_s28   ;;  %s2603_s27 = sphi %s2717_s27, %s3446_s27   ;;  %s2599_s26 = sphi %s2715_s26, %s3445_s26   ;;  %s2595_s25 = sphi %s2713_s25, %s3453_s25   ;;  %s2591_s24 = sphi %s2711_s24, %s3452_s24   ;;  %s2587_s23 = sphi %s2709_s23, %s3443_s23   ;;  %s2583_s22 = sphi %s2707_s22, %s3451_s22   ;;  %s2579_s21 = sphi %s2705_s21, %s3450_s21  }
  0x1d   : > { %3378 = sst [smem:[#allocation21_spill]] %s2591_s24  ;;  %p167_p1 = scmp.ne.s32.totalorder %s2587_s23, %s2583_s22 }
  0x1e   : > { %3379 = sst [smem:[#allocation22_spill]] %s2599_s26  ;;  %p3347_p2 = scmp.lt.s32.totalorder %s2619_s13, 4 }
  0x1f   : > { %3380 = sst [smem:[#allocation23_spill]] %s2603_s27  ;;  %p169_p3 = por %p167_p1, %p3348_p0 }
  0x20   : > { %3381 = sst [smem:[#allocation24_spill]] %s2607_s28  ;;  %s3346_s16 = sand.u32 1, %s2619_s13  }
  0x21   : > { %3382 = sst [smem:[#allocation25_spill]] %s2611_s29  ;;  %s2770_s17 = sand.u32 1, %s2587_s23  }
  0x22   : > { %3383 = sst [smem:[#allocation26_spill]] %s2615_s30  ;;  %s1941_s18 = sshll.u32 %s2770_s17, 5 }
  0x23   : > { %s2000_s19 = sshll.u32 %s2611_s29, 9  ;;  %s3384_s4 = sld [smem:[#allocation37_spill]] }
  0x24   : > { %s447_s15 = scalar_lea.vmem [#allocation6], %s1941_s18  ;;  %p2781_p4 = pnand %p3347_p2, %p169_p3 }
  0x25   : > { %s454_s14 = sshll.u32 %s447_s15, 4  ;;  %s2789_s10 = scalar_lea.sflag [#allocation7], %s3346_s16  ;;  %s2785_s14 = int_to_ptr.vmem [resolvable:$true] %s454_s14 }
  0x26   : > { %s3385_s11 = scalar_select %p2781_p4, 1, 0 }
  0x27   : > { %p2795_p6 = pneg %p2781_p4 }
  0x29   : > { %s2777_s28 = scalar_lea.hbm %s3384_s4, %s2000_s19  ;;  %s2310_s20 = scalar_lea.hbm %s3384_s4, 1024 }
  0x2a   : > { %s2305_s12 = scalar_lea.hbm %s2777_s28, 512  ;;  %p2311_p9 = scmp.lt.u32.totalorder %s2777_s28, %s3384_s4 }
  0x2b   : > { %p2306_p5 = scmp.ne.s32.totalorder %s2777_s28, %s2305_s12  ;;  %p2312_p10 = scmp.lt.u32.totalorder %s2310_s20, %s2305_s12 }
  0x2c   : > { %p2314_p12 = scmp.lt.u32.totalorder %s2305_s12, %s2777_s28 }
  0x2d   : > { %p2308_p7 = pnand %p2795_p6, %p2306_p5  ;;  %p2313_p11 = por %p2312_p10, %p2311_p9 }
  0x2f   : > { %p2309_p8 = pneg %p2308_p7  ;;  %p2315_p13 = por %p2314_p12, %p2313_p11 }
  0x31   : > { %p2316_p1 = pnand %p2315_p13, %p2309_p8 }
  0x33   : > { %2319 = shalt.err (!%p2316_p1)
}
  0x34   : > { %s2320_s16 = scalar_lea.vmem %s2785_s14, 512  ;;  %s2621_s15 = smov [#allocation6]  }
  0x35   : > { %p2321_p3 = scmp.ne.s32.totalorder %s2785_s14, %s2320_s16  ;;  %s2325_s18 = sshll.u32 %s2621_s15, 4  ;;  %s2326_s18 = int_to_ptr.vmem [resolvable:$false] %s2325_s18 }
  0x36   : > { %s2327_s3 = scalar_lea.vmem %s2326_s18, 1024  ;;  %p2328_p2 = scmp.lt.s32.totalorder %s2785_s14, %s2326_s18 }
  0x37   : > { %p2323_p5 = pnand %p2321_p3, %p2795_p6  ;;  %p2329_p0 = scmp.lt.s32.totalorder %s2327_s3, %s2320_s16 }
  0x39   : > { %p2324_p7 = pneg %p2323_p5  ;;  %p2330_p9 = por %p2329_p0, %p2328_p2 }
  0x3b   : > { %p2331_p10 = pnand %p2330_p9, %p2324_p7 }
  0x3d   : > { %2334 = shalt.err (!%p2331_p10)
}
  0x3e   : > { %s2622_s8 = smov 64   ;;  %s2623_s12 = smov 4  }
  0x3f   : > { %2148 = dma.hbm_to_vmem [thread:$0]  (!%p2781_p4), %s2777_s28, 512, %s2785_s14, %s2789_s10, %s2622_s8, %s2622_s8, %s2623_s12  }
  0x40   : > { %p1948_p8 = scmp.ge.s32.totalorder %s2619_s13, 1  ;;  %p552_p11 = scmp.lt.s32.totalorder %s2619_s13, 5 }
  0x41   : > { %s2822_s16 = sshll.u32 %s2611_s29, 4  ;;  %s3389_s6 = sld [smem:[#allocation39_spill]] }
  0x42   : > { %p2824_p0 = pnand %p1948_p8, %p552_p11  ;;  %s484_s4 = scalar_lea.vmem [#allocation9], %s2770_s17 }
  0x43   : > { %s491_s28 = sshll.u32 %s484_s4, 4  ;;  %s3390_s14 = sand.u32 1, %s2619_s13   ;;  %s492_s28 = int_to_ptr.vmem [resolvable:$true] %s491_s28 }
  0x44   : > { %s3387_s20 = scalar_select %p2824_p0, 1, 0 }
  0x45   : > { %s2837_s8 = scalar_lea.sflag [#allocation10], %s3390_s14 }
  0x46   : > { %3388 = sst [smem:[#allocation27_spill]] %s3387_s20 }
  0x47   : > { %s2832_s3 = scalar_lea.hbm %s3389_s6, %s2822_s16  ;;  %s2340_s15 = scalar_lea.hbm %s3389_s6, 32 }
  0x48   : > { %s2335_s12 = scalar_lea.hbm %s2832_s3, 16  ;;  %p2341_p1 = scmp.lt.u32.totalorder %s2832_s3, %s3389_s6 }
  0x49   : > { %p2336_p2 = scmp.ne.s32.totalorder %s2832_s3, %s2335_s12  ;;  %p2342_p3 = scmp.lt.u32.totalorder %s2340_s15, %s2335_s12 }
  0x4a   : > { %p2344_p7 = scmp.lt.u32.totalorder %s2335_s12, %s2832_s3 }
  0x4b   : > { %p2338_p12 = pnand %p2336_p2, %p2795_p6  ;;  %p2343_p5 = por %p2342_p3, %p2341_p1 }
  0x4d   : > { %p2339_p13 = pneg %p2338_p12  ;;  %p2345_p9 = por %p2344_p7, %p2343_p5 }
  0x4f   : > { %p2346_p10 = pnand %p2345_p9, %p2339_p13 }
  0x51   : > { %2349 = shalt.err (!%p2346_p10)
}
  0x52   : > { %s2350_s4 = scalar_lea.vmem %s492_s28, 16  ;;  %s2624_s14 = smov [#allocation9]  }
  0x53   : > { %p2351_p8 = scmp.ne.s32.totalorder %s492_s28, %s2350_s4  ;;  %s2355_s20 = sshll.u32 %s2624_s14, 4  ;;  %s2356_s20 = int_to_ptr.vmem [resolvable:$false] %s2355_s20 }
  0x54   : > { %s2357_s1 = scalar_lea.vmem %s2356_s20, 32  ;;  %p2358_p12 = scmp.lt.s32.totalorder %s492_s28, %s2356_s20 }
  0x55   : > { %p2353_p11 = pnand %p2351_p8, %p2795_p6  ;;  %p2359_p0 = scmp.lt.s32.totalorder %s2357_s1, %s2350_s4 }
  0x57   : > { %p2354_p2 = pneg %p2353_p11  ;;  %p2360_p4 = por %p2359_p0, %p2358_p12 }
  0x59   : > { %p2361_p1 = pnand %p2360_p4, %p2354_p2 }
  0x5b   : > { %2364 = shalt.err (!%p2361_p1)
}
  0x5c   : > { %p3391_p3 = scmp.ne.s32.totalorder %s3385_s11, 0  ;;  %s2858_s2 = sadd.s32 4294967295, %s2619_s13  }
  0x5d   : > { %s1936_s27 = sadd.s32 4294967294, %s2619_s13   ;;  %s3392_s20 = sadd.s32 1, %s2611_s29 }
  0x5e   : > { %2154 = dma.hbm_to_vmem [thread:$0]  (!%p3391_p3), %s2832_s3, 16, %s492_s28, %s2837_s8  }
  0x5f   : > { %p47_p4 = scmp.ge.s32.totalorder %s3392_s20, 2  ;;  %s49_s12 = sadd.s32 1, %s2615_s30 }
  0x60   : > { %s56_s15 = sadd.s32 1, %s2599_s26  ;;  %s3393_s18 = smov %s3392_s20 }
  0x61   : > { %s3456_s18 = smov (%p47_p4, %s3393_s18), 0  ;;  %s3458_s12 = smov (!%p47_p4, %s49_s12), %s2615_s30 }
  0x62   : > { %3394 = sst [smem:[#allocation28_spill]] %s3456_s18  ;;  %p63_p0 = scmp.ne.s32.totalorder %s2599_s26, %s2595_s25 }
  0x63   : > { %p69_p13 = scmp.ne.s32.totalorder %s2595_s25, %s2591_s24  ;;  %p51_p5 = scmp.ge.s32.totalorder %s3458_s12, 2 }
  0x64   : > { %p70_p7 = scmp.eq.s32.totalorder %s2858_s2, 0  ;;  %p3395_p9 = scmp.eq.s32.totalorder %s2619_s13, 0 }
  0x65   : > { %s157_s28 = ssub.s32 %s2611_s29, %s3456_s18  ;;  %s3460_s12 = smov (%p51_p5, %s3458_s12), 0 }
  0x66   : > { %p2880_p10 = por %p3395_p9, %p63_p0  ;;  %3397 = sst [smem:[#allocation29_spill]] %s3460_s12 }
  0x67   : > { %p2891_p8 = por %p70_p7, %p69_p13  ;;  %p158_p11 = scmp.eq.s32.totalorder %s157_s28, 0 }
  0x68   : > { %s53_s14 = ssub.s32 %s2615_s30, %s3460_s12  ;;  %p173_p2 = scmp.ne.s32.totalorder %s2583_s22, %s2579_s21 }
  0x69   : > { %s3398_s4 = scalar_select %p2891_p8, 1, 0 }
  0x6a   : > { %p54_p12 = scmp.eq.s32.totalorder %s53_s14, 0  ;;  %p379_p1 = scmp.eq.s32.totalorder %s2858_s2, 3 }
  0x6b   : > { %s3399_s1 = sadd.s32 1, %s2587_s23  ;;  %p2908_p4 = por %p173_p2, %p70_p7 }
  0x6c   : > { %s2903_s20 = scalar_select %p158_p11, %s2587_s23, %s3399_s1  }
  0x6d   : > { %s2906_s6 = scalar_select %p54_p12, %s2599_s26, %s56_s15  }
  0x6e   : > { %3400 = sst [smem:[#allocation30_spill]] %s2903_s20  ;;  %p2915_p5 = por %p379_p1, %p63_p0 }
  0x6f   : > { %3401 = sst [smem:[#allocation31_spill]] %s2906_s6  ;;  %p385_p9 = scmp.eq.s32.totalorder %s1936_s27, 3 }
  0x70   : > { %s3402_s18 = scalar_select %p2908_p4, 1, 0 }
  0x71   : > { %s3403_s28 = scalar_select %p2915_p5, 1, 0 }
  0x72   : > { %s405_s21 = sand.u32 1, %s2599_s26   ;;  %p2923_p8 = por %p385_p9, %p69_p13 }
  0x73   : > { %s1939_s14 = sshll.u32 %s405_s21, 3  ;;  %s1940_s1 = sshll.u32 %s2615_s30, 7 }
  0x74   : > { %s3404_s12 = scalar_select %p2923_p8, 1, 0 }
  0x75   : > { %s409_s15 = scalar_lea.vmem [#allocation3], %s1939_s14  ;;  %s3406_s0 = sld [smem:[#allocation33_spill]] }
  0x76   : > { %3405 = sst [smem:[#allocation32_spill]] %s3404_s12  ;;  %s416_s29 = sshll.u32 %s409_s15, 4  ;;  %s2933_s29 = int_to_ptr.vmem [resolvable:$true] %s416_s29 }
  0x77   : > { %p3407_p0 = scmp.lt.s32.totalorder %s2619_s13, 4  ;;  %s3409_s5 = sld [smem:[#allocation38_spill]] }
  0x78   : > { %s467_s20 = scalar_lea.vmem [#allocation8], %s2770_s17  ;;  %s406_s15 = scalar_lea.sflag [#allocation4], %s405_s21 }
  0x79   : > { %p2939_p13 = pnand %p3407_p0, %p2880_p10 }
  0x7b   : > { %s2931_s23 = scalar_lea.hbm %s3406_s0, %s1940_s1  ;;  %s474_s1 = sshll.u32 %s467_s20, 4  ;;  %s2950_s1 = int_to_ptr.vmem [resolvable:$true] %s474_s1 }
  0x7c   : > { %s2365_s26 = scalar_lea.hbm %s2931_s23, 128  ;;  %p2367_p11 = pneg %p2939_p13 }
  0x7d   : > { %s2947_s6 = scalar_lea.hbm %s3409_s5, %s2822_s16  ;;  %p2366_p7 = scmp.ne.s32.totalorder %s2931_s23, %s2365_s26 }
  0x7e   : > { %s2370_s30 = scalar_lea.hbm %s3406_s0, 256  ;;  %p2371_p12 = scmp.lt.u32.totalorder %s2931_s23, %s3406_s0 }
  0x7f   : > { %p2368_p10 = pnand %p2367_p11, %p2366_p7  ;;  %p2372_p1 = scmp.lt.u32.totalorder %s2370_s30, %s2365_s26 }
  0x80   : > { %p2374_p0 = scmp.lt.u32.totalorder %s2365_s26, %s2931_s23 }
  0x81   : > { %p2369_p2 = pneg %p2368_p10  ;;  %p2373_p9 = por %p2372_p1, %p2371_p12 }
  0x83   : > { %p2375_p8 = por %p2374_p0, %p2373_p9 }
  0x85   : > { %p2376_p5 = pnand %p2375_p8, %p2369_p2 }
  0x87   : > { %2379 = shalt.err (!%p2376_p5)
}
  0x88   : > { %s2380_s21 = scalar_lea.vmem %s2933_s29, 128  ;;  %s2625_s12 = smov [#allocation3]  }
  0x89   : > { %p2381_p7 = scmp.ne.s32.totalorder %s2933_s29, %s2380_s21  ;;  %s2385_s20 = sshll.u32 %s2625_s12, 4  ;;  %s2386_s20 = int_to_ptr.vmem [resolvable:$false] %s2385_s20 }
  0x8a   : > { %s2387_s24 = scalar_lea.vmem %s2386_s20, 256  ;;  %p2388_p3 = scmp.lt.s32.totalorder %s2933_s29, %s2386_s20 }
  0x8b   : > { %p2383_p10 = pnand %p2381_p7, %p2367_p11  ;;  %p2389_p12 = scmp.lt.s32.totalorder %s2387_s24, %s2380_s21 }
  0x8d   : > { %p2384_p4 = pneg %p2383_p10  ;;  %p2390_p1 = por %p2389_p12, %p2388_p3 }
  0x8f   : > { %p2391_p9 = pnand %p2390_p1, %p2384_p4 }
  0x91   : > { %2394 = shalt.err (!%p2391_p9)
}
  0x92   : > { %2145 = dma.hbm_to_vmem [thread:$0]  (!%p2939_p13), %s2931_s23, 128, %s2933_s29, %s406_s15  }
  0x93   : > { %s2395_s26 = scalar_lea.hbm %s2947_s6, 16  ;;  %s2400_s14 = scalar_lea.hbm %s3409_s5, 32 }
  0x94   : > { %p2396_p8 = scmp.ne.s32.totalorder %s2947_s6, %s2395_s26  ;;  %p2401_p3 = scmp.lt.u32.totalorder %s2947_s6, %s3409_s5 }
  0x95   : > { %p2402_p4 = scmp.lt.u32.totalorder %s2400_s14, %s2395_s26  ;;  %p2404_p0 = scmp.lt.u32.totalorder %s2395_s26, %s2947_s6 }
  0x96   : > { %p2398_p5 = pnand %p2396_p8, %p2795_p6 }
  0x97   : > { %p2403_p2 = por %p2402_p4, %p2401_p3 }
  0x98   : > { %p2399_p11 = pneg %p2398_p5 }
  0x99   : > { %p2405_p7 = por %p2404_p0, %p2403_p2 }
  0x9b   : > { %p2406_p10 = pnand %p2405_p7, %p2399_p11 }
  0x9d   : > { %2409 = shalt.err (!%p2406_p10)
}
  0x9e   : > { %s2410_s23 = scalar_lea.vmem %s2950_s1, 16  ;;  %s2626_s29 = smov [#allocation8]  }
  0x9f   : > { %p2411_p13 = scmp.ne.s32.totalorder %s2950_s1, %s2410_s23  ;;  %s2415_s27 = sshll.u32 %s2626_s29, 4  ;;  %s2416_s27 = int_to_ptr.vmem [resolvable:$false] %s2415_s27 }
  0xa0   : > { %s2417_s15 = scalar_lea.vmem %s2416_s27, 32  ;;  %p2418_p9 = scmp.lt.s32.totalorder %s2950_s1, %s2416_s27 }
  0xa1   : > { %p2413_p12 = pnand %p2411_p13, %p2795_p6  ;;  %p2419_p8 = scmp.lt.s32.totalorder %s2417_s15, %s2410_s23 }
  0xa3   : > { %p2414_p1 = pneg %p2413_p12  ;;  %p2420_p5 = por %p2419_p8, %p2418_p9 }
  0xa5   : > { %p2421_p3 = pnand %p2420_p5, %p2414_p1 }
  0xa7   : > { %2424 = shalt.err (!%p2421_p3)
}
  0xa8   : > { %p3410_p11 = scmp.ne.s32.totalorder %s3385_s11, 0  ;;  %s3411_s7 = sld [smem:[#allocation40_spill]] }
  0xa9   : > { %s501_s3 = scalar_lea.vmem [#allocation11], %s2770_s17 }
  0xaa   : > { %2151 = dma.hbm_to_vmem [thread:$0]  (!%p3410_p11), %s2947_s6, 16, %s2950_s1, %s2789_s10  }
  0xab   : > { %s508_s30 = sshll.u32 %s501_s3, 4  ;;  %s509_s30 = int_to_ptr.vmem [resolvable:$true] %s508_s30 }
  0xae   : > { %s3003_s26 = scalar_lea.hbm %s3411_s7, %s2822_s16  ;;  %s2430_s10 = scalar_lea.hbm %s3411_s7, 32 }
  0xaf   : > { %s2425_s14 = scalar_lea.hbm %s3003_s26, 16  ;;  %p2431_p7 = scmp.lt.u32.totalorder %s3003_s26, %s3411_s7 }
  0xb0   : > { %p2426_p4 = scmp.ne.s32.totalorder %s3003_s26, %s2425_s14  ;;  %p2432_p10 = scmp.lt.u32.totalorder %s2430_s10, %s2425_s14 }
  0xb1   : > { %p2434_p12 = scmp.lt.u32.totalorder %s2425_s14, %s3003_s26 }
  0xb2   : > { %p2428_p2 = pnand %p2426_p4, %p2795_p6  ;;  %p2433_p13 = por %p2432_p10, %p2431_p7 }
  0xb4   : > { %p2429_p0 = pneg %p2428_p2  ;;  %p2435_p1 = por %p2434_p12, %p2433_p13 }
  0xb6   : > { %p2436_p9 = pnand %p2435_p1, %p2429_p0 }
  0xb8   : > { %2439 = shalt.err (!%p2436_p9)
}
  0xb9   : > { %s2440_s23 = scalar_lea.vmem %s509_s30, 16  ;;  %s2627_s29 = smov [#allocation11]  }
  0xba   : > { %p2441_p8 = scmp.ne.s32.totalorder %s509_s30, %s2440_s23  ;;  %s2445_s27 = sshll.u32 %s2627_s29, 4  ;;  %s2446_s27 = int_to_ptr.vmem [resolvable:$false] %s2445_s27 }
  0xbb   : > { %s2447_s15 = scalar_lea.vmem %s2446_s27, 32  ;;  %p2448_p4 = scmp.lt.s32.totalorder %s509_s30, %s2446_s27 }
  0xbc   : > { %p2443_p5 = pnand %p2441_p8, %p2795_p6  ;;  %p2449_p2 = scmp.lt.s32.totalorder %s2447_s15, %s2440_s23 }
  0xbe   : > { %p2444_p3 = pneg %p2443_p5  ;;  %p2450_p11 = por %p2449_p2, %p2448_p4 }
  0xc0   : > { %p2451_p7 = pnand %p2450_p11, %p2444_p3 }
  0xc2   : > { %2454 = shalt.err (!%p2451_p7)
}
  0xc3   : > { %p3412_p10 = scmp.ne.s32.totalorder %s3385_s11, 0  ;;  %s3028_s3 = scalar_lea.hbm %s3341_s9, %s2822_s16 }
  0xc4   : > { %s526_s14 = scalar_lea.vmem [#allocation12], %s2770_s17  ;;  %s524_s12 = scalar_lea.sflag [#allocation13], %s2770_s17 }
  0xc5   : > { %2157 = dma.hbm_to_vmem [thread:$0]  (!%p3412_p10), %s3003_s26, 16, %s509_s30, %s2837_s8  }
  0xc6   : > { %s533_s21 = sshll.u32 %s526_s14, 4  ;;  %s2455_s10 = scalar_lea.hbm %s3028_s3, 16  ;;  %s534_s21 = int_to_ptr.vmem [resolvable:$true] %s533_s21 }
  0xc7   : > { %p2456_p11 = scmp.ne.s32.totalorder %s3028_s3, %s2455_s10  ;;  %s2460_s26 = scalar_lea.hbm %s3341_s9, 32 }
  0xc8   : > { %p2461_p12 = scmp.lt.u32.totalorder %s3028_s3, %s3341_s9  ;;  %p2462_p1 = scmp.lt.u32.totalorder %s2460_s26, %s2455_s10 }
  0xc9   : > { %p2458_p0 = pnand %p2456_p11, %p2795_p6  ;;  %p2464_p8 = scmp.lt.u32.totalorder %s2455_s10, %s3028_s3 }
  0xca   : > { %p2463_p9 = por %p2462_p1, %p2461_p12 }
  0xcb   : > { %p2459_p13 = pneg %p2458_p0 }
  0xcc   : > { %p2465_p5 = por %p2464_p8, %p2463_p9 }
  0xce   : > { %p2466_p3 = pnand %p2465_p5, %p2459_p13 }
  0xd0   : > { %2469 = shalt.err (!%p2466_p3)
}
  0xd1   : > { %s2470_s17 = scalar_lea.vmem %s534_s21, 16  ;;  %s2628_s1 = smov [#allocation12]  }
  0xd2   : > { %p2471_p4 = scmp.ne.s32.totalorder %s534_s21, %s2470_s17  ;;  %s2475_s23 = sshll.u32 %s2628_s1, 4  ;;  %s2476_s23 = int_to_ptr.vmem [resolvable:$false] %s2475_s23 }
  0xd3   : > { %s2477_s29 = scalar_lea.vmem %s2476_s23, 32  ;;  %p2478_p11 = scmp.lt.s32.totalorder %s534_s21, %s2476_s23 }
  0xd4   : > { %p2473_p2 = pnand %p2471_p4, %p2795_p6  ;;  %p2479_p0 = scmp.lt.s32.totalorder %s2477_s29, %s2470_s17 }
  0xd6   : > { %p2474_p7 = pneg %p2473_p2  ;;  %p2480_p10 = por %p2479_p0, %p2478_p11 }
  0xd8   : > { %p2481_p1 = pnand %p2480_p10, %p2474_p7 }
  0xda   : > { %2484 = shalt.err (!%p2481_p1)
}
  0xdb   : > { %p3413_p12 = scmp.ne.s32.totalorder %s3385_s11, 0  ;;  %s3414_s27 = sld [smem:[#allocation27_spill]] }
  0xdd   : > { %2160 = dma.hbm_to_vmem [thread:$0]  (!%p3413_p12), %s3028_s3, 16, %s534_s21, %s524_s12  }
  0xe1   : > { %p3415_p13 = scmp.ne.s32.totalorder %s3414_s27, 0 }
  0xe2   : > { %s3052_s19 = sand.u32 (!%p3415_p13), 1, %s2595_s25   ;;  %p3416_p6 = scmp.ne.s32.totalorder (!%p3415_p13), %s3398_s4, 0 }
  0xe3   : > { %556 = sbr.rel (%p3415_p13) target bundleno = 3503 (0xdaf), region = 68  ;;  %s3364_s15 = sshll.u32 (!%p3415_p13), %s3052_s19, 3 }
  0xe4   : > { %s559_s20 = scalar_lea.sflag (!%p3415_p13), [#allocation4], %s3052_s19  ;;  %s3058_s24 = scalar_lea.vmem (!%p3415_p13), [#allocation3], %s3364_s15 }
  0xea   : > { %2558 = dma.done.wait (%p3416_p6), %s559_s20, 128  }
  0xeb   : > { %2560 = vsyncadd (%p3416_p6), %s559_s20, 4294967168  ;;  %s567_s11 = sand.u32 1, %s2858_s2   ;;  %s3066_s3 = sand.u32 1, %s2583_s22  }
  0xec   : > { %s1950_s14 = sshll.u32 %s3066_s3, 5  ;;  %s568_s21 = scalar_lea.sflag [#allocation7], %s567_s11 }
  0xed   : > { %s3069_s12 = scalar_lea.vmem [#allocation6], %s1950_s14  ;;  %p3417_p10 = scmp.ne.s32.totalorder %s3402_s18, 0 }
  0xef   : > { %2562 = dma.done.wait (%p3417_p10), %s568_s21, 528  }
  0xf0   : > { %2564 = vsyncadd (%p3417_p10), %s568_s21, 4294966768  ;;  %s585_s10 = scalar_lea.sflag [#allocation10], %s567_s11 }
  0xf1   : > { %2566 = dma.done.wait (%p3417_p10), %s585_s10, 32  }
  0xf2   : > { %2568 = vsyncadd (%p3417_p10), %s585_s10, 4294967264  ;;  %s601_s8 = scalar_lea.sflag [#allocation13], %s3066_s3 }
  0xf3   : > { %2570 = dma.done.wait (%p3417_p10), %s601_s8, 16  }
  0xf4   : > { %2572 = vsyncadd (%p3417_p10), %s601_s8, 4294967280  ;;  %s3418_s30 = sld [smem:[#allocation23_spill]]  ;;  %s3421_s26 = sld [smem:[#allocation36_spill]] }
  0xf5   : > { %s3422_s15 = sld [smem:[#allocation41_spill]]  ;;  %s3423_s5 = sld [smem:[#allocation42_spill]] }
  0xf6   : > { %s3424_s27 = sld [smem:[#allocation43_spill]]  ;;  %s3425_s11 = sshll.u32 %s3052_s19, 3 }
  0xf7   : > { %s3121_s18 = scalar_lea.vmem [#allocation14], %s3425_s11 }
  0xfa   : > { %p689_p9 = scmp.lt.s32.totalorder %s3418_s30, 1  ;;  %p1958_p8 = scmp.ne.s32.totalorder %s3418_s30, 0 }
  0xfb   : > { %v718_v0 = vld [vmem:[%s3058_s24] sm:$0xff] (!%p1958_p8)  ;;  %vm719_vm0 = vcmask (!%p1958_p8), 261120  }
  0xfc   : > { %s3090_s16 = scalar_select %p689_p9, %s3418_s30, 1 }
  0xfd   : > { %717 = sbr.rel (%p1958_p8) target bundleno = 260 (0x104), region = 96  ;;  %720 = vst.msk [vmem:[#allocation2] sm:$0xff] (!%p1958_p8), %vm719_vm0, %v718_v0 }
  0xfe   : > { %s2001_s14 = sshll.u32 %s3090_s16, 5  ;;  %s2002_s21 = sshll.u32 %s3090_s16, 4 }
  0xff   : > { %s699_s2 = scalar_lea.vmem %s3421_s26, %s2001_s14  ;;  %s3108_s0 = scalar_lea.vmem %s3422_s15, %s2002_s21 }
 0x100   : > { %s3113_s7 = scalar_lea.vmem %s3423_s5, %s2001_s14  ;;  %s712_s20 = scalar_lea.vmem %s3424_s27, %s3090_s16 }
 0x104 PF: > { %v3125_v1 = vld [vmem:[#allocation2] sm:$0xff]  ;;  %vm724_vm1 = vcmask 261120   ;;  %v2270_v10 = vld [vmem:[%s699_s2 + $0x14] ss:$8 sps:$4 sm:$0xff]   ;;  %v2629_v11 = vmov 0   ;;  %s3426_s24 = sld [smem:[#allocation34_spill]] }
 0x105   : > { %v725_v2 = vsel %vm724_vm1, %v3125_v1, 0.0  ;;  %v2267_v8 = vld [vmem:[%s699_s2 + $0x4] ss:$8 sps:$4 sm:$0xff]   ;;  %v2269_v9 = vld [vmem:[%s699_s2] ss:$8 sps:$4 sm:$0xff]   ;;  %813 = vmatprep.mubr.bf16.mxu1 %v2629_v11  ;;  %s3428_s30 = sld [smem:[#allocation35_spill]] }
 0x106   : > { %726 = vadd.xlane.f32.xlu0 %v725_v2  ;;  %781 = vmatprep.subr.bf16.mxu1 %v2267_v8  ;;  %v2272_v12 = vld [vmem:[%s699_s2 + $0x10] ss:$8 sps:$4 sm:$0xff]   ;;  %v2630_v23 = vmov 0.0   ;;  %vm2631_vm2 = vmmov 0   ;;  %vm896_vm3 = vcmask 1043456   ;;  %s2632_s2 = smov 112  }
 0x107   : > { %782 = vmatpush1.bf16.msra.mxu1 %v2269_v9  ;;  %2042 = vmatprep.subr.bf16.mxu0 %v2630_v23  ;;  %s2633_s14 = smov 64   ;;  %s2634_s21 = smov 48   ;;  %vm835_vm4 = vcmask 130048   ;;  %vm882_vm5 = vcmask 64512   ;;  %v2273_v60 = vld [vmem:[%s3069_s12] sm:$0xff]   ;;  %v2274_v61 = vld [vmem:[%s3069_s12 + $0x8] sm:$0xff]  }
 0x108   : > { %783 = vmatprep.subr.bf16.mxu1 %v2270_v10  ;;  %2044 = vmatprep.mubr.msk.bf16.mxu0 %vm2631_vm2, %v2630_v23  ;;  %s2635_s10 = smov 32   ;;  %s2636_s8 = smov 96   ;;  %vm1629_vm6 = vcmask 523264  }
 0x109   : > { %s2637_s17 = smov 80   ;;  %s2638_s1 = smov 16  }
 0x10a   : > { %s3427_s4 = scalar_lea.vmem %s3426_s24, %s3090_s16  ;;  %s3431_s23 = scalar_lea.vmem [#allocation9], %s3066_s3 }
 0x10b   : > { %784 = vmatpush1.bf16.msra.mxu1 %v2272_v12  ;;  %v1959_v17 = vld [vmem:[%s3427_s4] ss:$0 sm:$0xff]  ;;  %s3429_s29 = scalar_lea.vmem %s3428_s30, %s3090_s16  ;;  %s3432_s27 = scalar_lea.vmem [#allocation11], %s3066_s3 }
 0x10c   : > { %v1960_v19 = vld [vmem:[%s3429_s29] ss:$0 sm:$0xff]  ;;  %2036 = vmatprep.subr.bf16.mxu1 %v2630_v23  ;;  %s3435_s5 = sld [smem:[#allocation23_spill]] }
 0x112   : > { %p1995_p5 = scmp.ne.s32.totalorder %s3435_s5, 1 }
 0x193   : > { %v727_v3 = vpop.xlane.xlu0 %726 }
 0x194   : > { %v729_v4 = vmul.f32 0.03125, %v727_v3 }
 0x196   : > { %v730_v5 = vsub.f32 %v3125_v1, %v729_v4 }
 0x198   : > { %v731_v6 = vmul.f32 %v730_v5, %v730_v5 }
 0x19a   : > { %v732_v7 = vsel %vm724_vm1, %v731_v6, 0.0 }
 0x19b   : > { %733 = vadd.xlane.f32.xlu0 %v732_v7 }
 0x228   : > { %v734_v13 = vpop.xlane.xlu0 %733 }
 0x229   : > { %v735_v14 = vmul.f32 0.03125, %v734_v13 }
 0x22b   : > { %v736_v15 = vadd.f32 1e-05, %v735_v14 }
 0x22d   : > { %2283 = vrsqrt.f32 %v736_v15 }
 0x237   : > { %v2284_v16 = vpop.eup %2283 }
 0x238   : > { %v738_v18 = vmul.f32 %v2284_v16, %v730_v5 }
 0x23a   : > { %v745_v20 = vmul.f32 %v1959_v17, %v738_v18 }
 0x23c   : > { %v752_v21 = vadd.f32 %v1960_v19, %v745_v20 }
 0x23e   : > { %v753_v22 = vpack.c.bf16 %v752_v21, %v752_v21 }
 0x240   : > { %1965 = vmatmul.mubr.msk.bf16.vlgmr.msra.gmra.mrb[0].mxu1 %vm724_vm1, %v753_v22 }
 0x241   : > { %2038 = vmatprep.mubr.msk.bf16.mxu1 %vm2631_vm2, %v2630_v23 }
 0x313   : > { %v815_v24 = vpop.f32.mrb[0].mxu1 }
 0x314   : > { %v3148_v25 = vpack.c.bf16 %v815_v24, %v815_v24  ;;  %v817_v26 = vpop.f32.mrb[1].mxu1 }
 0x315   : > { %v3150_v27 = vpack.c.bf16 %v817_v26, %v817_v26  ;;  %v819_v28 = vpop.f32.mrb[2].mxu1 }
 0x316   : > { %943 = vrot.lane.b32.xlu0 %v3148_v25, %s2632_s2  ;;  %833 = vrot.lane.b32.xlu1 %v3148_v25, %s2633_s14  ;;  %v820_v29 = vpop.f32.mrb[3].mxu1 }
 0x317   : > { %v898_v30 = vsel %vm896_vm3, %v3150_v27, 0 }
 0x318   : > { %2043 = vmatpush3.bf16.msra.mxu0 %v898_v30 }
 0x319   : > { %2054 = vmatprep.subr.bf16.mxu0 %v2630_v23 }
 0x31a   : > { %945 = vrot.lane.b32.xlu1 %v3148_v25, %s2634_s21 }
 0x388   : > { %v834_v31 = vpop.permute.xlu1 %833  ;;  %v944_v35 = vpop.permute.xlu0 %943 }
 0x389   : > { %v840_v32 = vsel %vm835_vm4, %v834_v31, 0 }
 0x38a   : > { %2037 = vmatpush3.bf16.xpose.msra.mxu1 %v840_v32 }
 0x38b   : > { %2048 = vmatprep.subr.bf16.mxu1 %v2630_v23 }
 0x38c   : > { %v946_v33 = vpop.permute.xlu1 %945 }
 0x38d   : > { %v951_v34 = vsel %vm835_vm4, %v946_v33, 0 }
 0x391   : > { %2039 = vmatmul.mubr.msk.bf16.vlgmr.msra.gmra.mrb[4].mxu1 %vm835_vm4, %v3148_v25 }
 0x392   : > { %2049 = vmatpush3.bf16.xpose.msra.mxu1 %v951_v34  ;;  %2050 = vmatprep.mubr.msk.bf16.mxu1 %vm2631_vm2, %v2630_v23 }
 0x393   : > { %2060 = vmatprep.subr.bf16.mxu1 %v2630_v23 }
 0x399   : > { %2051 = vmatmul.mubr.msk.bf16.vlgmr.msra.gmra.mrb[8].mxu1 %vm835_vm4, %v944_v35 }
 0x39a   : > { %2062 = vmatprep.mubr.msk.bf16.mxu1 %vm2631_vm2, %v2630_v23  ;;  %2061 = vmatpush3.bf16.msra.mxu1 %v2274_v61 }
 0x39b   : > { %2072 = vmatprep.subr.bf16.mxu1 %v2630_v23 }
 0x464   : > { %v876_v36 = vpop.f32.mrb[4].mxu1 }
 0x465   : > { %v2040_v37 = vpop.f32.mrb[5].mxu1  ;;  %v883_v38 = vsel %vm882_vm5, %v876_v36, -inf }
 0x466   : > { %884 = vmax.xlane.f32.xlu1 %v883_v38  ;;  %v879_v39 = vpop.f32.mrb[6].mxu1 }
 0x467   : > { %v2041_v40 = vpop.f32.mrb[7].mxu1 }
 0x46c   : > { %v987_v41 = vpop.f32.mrb[8].mxu1 }
 0x46d   : > { %v2052_v42 = vpop.f32.mrb[9].mxu1  ;;  %v993_v43 = vsel %vm882_vm5, %v987_v41, -inf }
 0x46e   : > { %994 = vmax.xlane.f32.xlu0 %v993_v43  ;;  %v990_v44 = vpop.f32.mrb[10].mxu1 }
 0x46f   : > { %v2053_v45 = vpop.f32.mrb[11].mxu1 }
 0x470   : > { %v2275_v45 = vld [vmem:[%s3069_s12 + $0x10] sm:$0xff]  }
 0x477   : > { %1004 = vrot.lane.b32.xlu1 %v3150_v27, %s2632_s2 }
 0x47b   : > { %1155 = vrot.lane.b32.xlu1 %v3148_v25, %s2635_s10 }
 0x4f3   : > { %v885_v46 = vpop.xlane.xlu1 %884 }
 0x4f4   : > { %v886_v47 = vsub.f32 %v876_v36, %v885_v46 }
 0x4f6   : > { %v887_v48 = vmul.f32 1.442695, %v886_v47 }
 0x4f7   : > { %v1005_v53 = vpop.permute.xlu1 %1004 }
 0x4f8   : > { %2285 = vpow2.f32 %v887_v48  ;;  %v1010_v56 = vsel %vm896_vm3, %v1005_v53, 0 }
 0x4fb   : > { %v995_v49 = vpop.xlane.xlu0 %994  ;;  %v1156_v62 = vpop.permute.xlu1 %1155 }
 0x4fc   : > { %v996_v50 = vsub.f32 %v987_v41, %v995_v49  ;;  %v1161_v18 = vsel %vm835_vm4, %v1156_v62, 0 }
 0x4fe   : > { %v997_v51 = vmul.f32 1.442695, %v996_v50 }
 0x500   : > { %2287 = vpow2.f32 %v997_v51 }
 0x502   : > { %v2286_v52 = vpop.eup %2285 }
 0x503   : > { %v889_v54 = vsel %vm882_vm5, %v2286_v52, 0.0  ;;  %v892_v55 = vpack.c.bf16 %v2286_v52, %v2286_v52 }
 0x504   : > { %890 = vadd.xlane.f32.xlu1 %v889_v54 }
 0x505   : > { %2045 = vmatmul.mubr.msk.bf16.vlgmr.msra.gmra.mrb[0].mxu0 %vm882_vm5, %v892_v55 }
 0x506   : > { %2055 = vmatpush3.bf16.msra.mxu0 %v1010_v56  ;;  %2056 = vmatprep.mubr.msk.bf16.mxu0 %vm2631_vm2, %v2630_v23 }
 0x507   : > { %2066 = vmatprep.subr.bf16.mxu0 %v2630_v23 }
 0x50a   : > { %v2288_v57 = vpop.eup %2287 }
 0x50b   : > { %v999_v58 = vsel %vm882_vm5, %v2288_v57, 0.0  ;;  %v1002_v59 = vpack.c.bf16 %v2288_v57, %v2288_v57 }
 0x50c   : > { %1000 = vadd.xlane.f32.xlu0 %v999_v58 }
 0x50d   : > { %2057 = vmatmul.mubr.msk.bf16.vlgmr.msra.gmra.mrb[4].mxu0 %vm882_vm5, %v1002_v59 }
 0x50e   : > { %2068 = vmatprep.mubr.msk.bf16.mxu0 %vm2631_vm2, %v2630_v23  ;;  %2067 = vmatpush3.bf16.msra.mxu0 %v2273_v60 }
 0x50f   : > { %2078 = vmatprep.subr.bf16.mxu0 %v2630_v23 }
 0x515   : > { %1213 = vrot.lane.b32.xlu1 %v3150_v27, %s2636_s8 }
 0x519   : > { %1314 = vrot.lane.b32.xlu1 %v3148_v25, %s2637_s17 }
 0x522   : > { %1153 = vrot.lane.b32.xlu0 %v3148_v25, %s2636_s8 }
 0x591   : > { %v891_v63 = vpop.xlane.xlu1 %890 }
 0x592   : > { %2289 = vrcp.f32 %v891_v63 }
 0x595   : > { %v1214_v6 = vpop.permute.xlu1 %1213 }
 0x596   : > { %v1219_v10 = vsel %vm896_vm3, %v1214_v6, 0 }
 0x599   : > { %v1001_v0 = vpop.xlane.xlu0 %1000 }
 0x59a   : > { %2291 = vrcp.f32 %v1001_v0 }
 0x59c   : > { %v2290_v2 = vpop.eup %2289 }
 0x59d   : > { %v1154_v19 = vpop.permute.xlu0 %1153 }
 0x5a4   : > { %v2292_v11 = vpop.eup %2291 }
 0x5d8   : > { %v934_v3 = vpop.f32.mrb[0].mxu0 }
 0x5d9   : > { %v941_v4 = vmul.f32 %v2290_v2, %v934_v3  ;;  %v2046_v5 = vpop.f32.mrb[1].mxu0  ;;  %v2276_v3 = vld [vmem:[%s3069_s12 + $0x18] sm:$0xff]   ;;  %s3430_s12 = scalar_lea.vmem [#allocation8], %s3066_s3 }
 0x5da   : > { %v937_v7 = vpop.f32.mrb[2].mxu0 }
 0x5db   : > { %v942_v8 = vpack.c.bf16 %v941_v4, %v941_v4  ;;  %v2047_v9 = vpop.f32.mrb[3].mxu0 }
 0x5dd   : > { %2069 = vmatmul.mubr.msk.bf16.vlgmr.msra.gmra.mrb[8].mxu0 %vm835_vm4, %v942_v8 }
 0x5de   : > { %2079 = vmatpush3.bf16.msra.mxu0 %v1219_v10  ;;  %2080 = vmatprep.mubr.msk.bf16.mxu0 %vm2631_vm2, %v2630_v23 }
 0x5df   : > { %2090 = vmatprep.subr.bf16.mxu0 %v2630_v23 }
 0x5e0   : > { %v1046_v12 = vpop.f32.mrb[4].mxu0 }
 0x5e1   : > { %v1053_v13 = vmul.f32 %v2292_v11, %v1046_v12  ;;  %v2058_v14 = vpop.f32.mrb[5].mxu0 }
 0x5e2   : > { %v1049_v15 = vpop.f32.mrb[6].mxu0 }
 0x5e3   : > { %v1054_v16 = vpack.c.bf16 %v1053_v13, %v1053_v13  ;;  %v2059_v17 = vpop.f32.mrb[7].mxu0 }
 0x5e5   : > { %2063 = vmatmul.mubr.msk.bf16.vlgmr.msra.gmra.mrb[12].mxu1 %vm835_vm4, %v1054_v16 }
 0x5e6   : > { %2073 = vmatpush3.bf16.xpose.msra.mxu1 %v1161_v18  ;;  %2074 = vmatprep.mubr.msk.bf16.mxu1 %vm2631_vm2, %v2630_v23 }
 0x5e7   : > { %2084 = vmatprep.subr.bf16.mxu1 %v2630_v23 }
 0x5ed   : > { %2075 = vmatmul.mubr.msk.bf16.vlgmr.msra.gmra.mrb[16].mxu1 %vm835_vm4, %v1154_v19 }
 0x5ee   : > { %2086 = vmatprep.mubr.msk.bf16.mxu1 %vm2631_vm2, %v2630_v23  ;;  %2085 = vmatpush3.bf16.msra.mxu1 %v2275_v45  ;;  %v2280_v45 = vld [vmem:[%s3113_s7 + $0x8] sm:$0xff]  }
 0x5ef   : > { %2096 = vmatprep.subr.bf16.mxu1 %v2630_v23 }
 0x6b0   : > { %v1147_v20 = vpop.f32.mrb[8].mxu0 }
 0x6b1   : > { %v2070_v21 = vpop.f32.mrb[9].mxu0 }
 0x6b2   : > { %v1150_v22 = vpop.f32.mrb[10].mxu0 }
 0x6b3   : > { %v2071_v24 = vpop.f32.mrb[11].mxu0 }
 0x6b8   : > { %v1098_v26 = vpop.f32.mrb[12].mxu1 }
 0x6b9   : > { %v3206_v28 = vadd.f32 %v1147_v20, %v1098_v26  ;;  %v2064_v29 = vpop.f32.mrb[13].mxu1  ;;  %v1982_v20 = vld [vmem:[%s3430_s12] ss:$0 sm:$0xff] }
 0x6ba   : > { %v1101_v30 = vpop.f32.mrb[14].mxu1 }
 0x6bb   : > { %v2065_v31 = vpop.f32.mrb[15].mxu1 }
 0x6c0   : > { %v1197_v32 = vpop.f32.mrb[16].mxu1 }
 0x6c1   : > { %v2076_v33 = vpop.f32.mrb[17].mxu1  ;;  %v1203_v34 = vsel %vm882_vm5, %v1197_v32, -inf }
 0x6c2   : > { %1204 = vmax.xlane.f32.xlu0 %v1203_v34  ;;  %v1200_v35 = vpop.f32.mrb[18].mxu1  ;;  %v2277_v34 = vld [vmem:[%s3108_s0] sm:$0xff]  }
 0x6c3   : > { %v2077_v36 = vpop.f32.mrb[19].mxu1  ;;  %v2278_v35 = vld [vmem:[%s3108_s0 + $0x8] sm:$0xff]   ;;  %s3433_s0 = scalar_lea.vmem [#allocation12], %s3066_s3 }
 0x6d8   : > { %1316 = vrot.lane.b32.xlu0 %v3148_v25, %s2638_s1  ;;  %v1315_v25 = vpop.permute.xlu1 %1314 }
 0x74f   : > { %v1205_v37 = vpop.xlane.xlu0 %1204 }
 0x750   : > { %v1206_v38 = vsub.f32 %v1197_v32, %v1205_v37 }
 0x752   : > { %v1207_v39 = vmul.f32 1.442695, %v1206_v38 }
 0x753   : > { %v1317_v41 = vpop.permute.xlu0 %1316 }
 0x754   : > { %2293 = vpow2.f32 %v1207_v39  ;;  %v1322_v44 = vsel %vm835_vm4, %v1317_v41, 0  ;;  %v1983_v39 = vld [vmem:[%s3431_s23] ss:$0 sm:$0xff] }
 0x755   : > { %v1984_v41 = vld [vmem:[%s3432_s27] ss:$0 sm:$0xff] }
 0x75e   : > { %v2294_v40 = vpop.eup %2293 }
 0x75f   : > { %v1209_v42 = vsel %vm882_vm5, %v2294_v40, 0.0  ;;  %v1212_v43 = vpack.c.bf16 %v2294_v40, %v2294_v40 }
 0x760   : > { %1210 = vadd.xlane.f32.xlu1 %v1209_v42 }
 0x761   : > { %2081 = vmatmul.mubr.msk.bf16.vlgmr.msra.gmra.mrb[12].mxu0 %vm882_vm5, %v1212_v43 }
 0x762   : > { %2091 = vmatpush3.bf16.xpose.msra.mxu0 %v1322_v44  ;;  %2092 = vmatprep.mubr.msk.bf16.mxu0 %vm2631_vm2, %v2630_v23 }
 0x763   : > { %2102 = vmatprep.subr.bf16.mxu0 %v2630_v23 }
 0x769   : > { %2093 = vmatmul.mubr.msk.bf16.vlgmr.msra.gmra.mrb[16].mxu0 %vm835_vm4, %v1315_v25  ;;  %v2279_v25 = vld [vmem:[%s3113_s7] sm:$0xff]  }
 0x76a   : > { %2104 = vmatprep.mubr.msk.bf16.mxu0 %vm2631_vm2, %v2630_v23  ;;  %2103 = vmatpush3.bf16.msra.mxu0 %v2276_v3 }
 0x76b   : > { %2116 = vmatprep.subr.bf16.mxu0 %v2630_v23 }
 0x771   : > { %1374 = vrot.lane.b32.xlu1 %v3150_v27, %s2637_s17 }
 0x7ed   : > { %v1211_v46 = vpop.xlane.xlu1 %1210 }
 0x7ee   : > { %2295 = vrcp.f32 %v1211_v46  ;;  %v2281_v46 = vld [vmem:[%s3113_s7 + $0x10] sm:$0xff]  }
 0x7f1   : > { %v1375_v51 = vpop.permute.xlu1 %1374 }
 0x7f2   : > { %v1380_v55 = vsel %vm896_vm3, %v1375_v51, 0 }
 0x7f8   : > { %v2296_v47 = vpop.eup %2295 }
 0x834   : > { %v1255_v48 = vpop.f32.mrb[12].mxu0 }
 0x835   : > { %v1262_v49 = vmul.f32 %v2296_v47, %v1255_v48  ;;  %v2082_v50 = vpop.f32.mrb[13].mxu0  ;;  %v2282_v47 = vld [vmem:[%s3113_s7 + $0x18] sm:$0xff]   ;;  %v1985_v48 = vld [vmem:[%s3433_s0] ss:$0 sm:$0xff] }
 0x836   : > { %v1258_v52 = vpop.f32.mrb[14].mxu0 }
 0x837   : > { %v1263_v53 = vpack.c.bf16 %v1262_v49, %v1262_v49  ;;  %v2083_v54 = vpop.f32.mrb[15].mxu0 }
 0x839   : > { %2087 = vmatmul.mubr.msk.bf16.vlgmr.msra.gmra.mrb[20].mxu1 %vm835_vm4, %v1263_v53 }
 0x83a   : > { %2097 = vmatpush3.bf16.msra.mxu1 %v1380_v55  ;;  %2098 = vmatprep.mubr.msk.bf16.mxu1 %vm2631_vm2, %v2630_v23 }
 0x83b   : > { %2108 = vmatprep.subr.bf16.mxu1 %v2630_v23 }
 0x83c   : > { %v1358_v27 = vpop.f32.mrb[16].mxu0 }
 0x83d   : > { %v2094_v56 = vpop.f32.mrb[17].mxu0  ;;  %v1364_v57 = vsel %vm882_vm5, %v1358_v27, -inf }
 0x83e   : > { %1365 = vmax.xlane.f32.xlu0 %v1364_v57  ;;  %v1361_v58 = vpop.f32.mrb[18].mxu0 }
 0x83f   : > { %v2095_v59 = vpop.f32.mrb[19].mxu0 }
 0x8cb   : > { %v1366_v60 = vpop.xlane.xlu0 %1365 }
 0x8cc   : > { %v1367_v61 = vsub.f32 %v1358_v27, %v1366_v60 }
 0x8ce   : > { %v1368_v62 = vmul.f32 1.442695, %v1367_v61 }
 0x8d0   : > { %2297 = vpow2.f32 %v1368_v62  ;;  %v1989_v62 = vld [vmem:[%s712_s20] ss:$0 sm:$0xff] }
 0x8da   : > { %v2298_v63 = vpop.eup %2297 }
 0x8db   : > { %v1370_v0 = vsel %vm882_vm5, %v2298_v63, 0.0  ;;  %v1373_v2 = vpack.c.bf16 %v2298_v63, %v2298_v63 }
 0x8dc   : > { %1371 = vadd.xlane.f32.xlu0 %v1370_v0 }
 0x8dd   : > { %2099 = vmatmul.mubr.msk.bf16.vlgmr.msra.gmra.mrb[24].mxu1 %vm882_vm5, %v1373_v2 }
 0x8de   : > { %2112 = vmatprep.mubr.msk.bf16.mxu1 %vm2631_vm2, %v2630_v23  ;;  %2109 = vmatpush3.bf16.msra.mxu1 %v2277_v34 }
 0x8df   : > { %2110 = vmatprep.subr.bf16.mxu1 %v2630_v23 }
 0x8e2   : > { %2111 = vmatpush3.bf16.msra.mxu1 %v2278_v35 }
 0x90c   : > { %v1307_v4 = vpop.f32.mrb[20].mxu1 }
 0x90d   : > { %v1313_v5 = vadd.f32 %v1307_v4, %v3206_v28  ;;  %v2088_v6 = vpop.f32.mrb[21].mxu1 }
 0x90e   : > { %v1310_v7 = vpop.f32.mrb[22].mxu1 }
 0x90f   : > { %v2089_v8 = vpop.f32.mrb[23].mxu1 }
 0x969   : > { %v1372_v9 = vpop.xlane.xlu0 %1371 }
 0x96a   : > { %2299 = vrcp.f32 %v1372_v9 }
 0x974   : > { %v2300_v10 = vpop.eup %2299 }
 0x9b0   : > { %v1416_v11 = vpop.f32.mrb[24].mxu1 }
 0x9b1   : > { %v1423_v12 = vmul.f32 %v2300_v10, %v1416_v11  ;;  %v2100_v13 = vpop.f32.mrb[25].mxu1 }
 0x9b2   : > { %v1419_v14 = vpop.f32.mrb[26].mxu1 }
 0x9b3   : > { %v1424_v15 = vpack.c.bf16 %v1423_v12, %v1423_v12  ;;  %v2101_v16 = vpop.f32.mrb[27].mxu1 }
 0x9b5   : > { %2105 = vmatmul.mubr.msk.bf16.vlgmr.msra.gmra.mrb[20].mxu0 %vm835_vm4, %v1424_v15 }
 0x9b6   : > { %2124 = vmatprep.mubr.msk.bf16.mxu0 %vm2631_vm2, %v2630_v23  ;;  %2117 = vmatpush3.bf16.msra.mxu0 %v2279_v25 }
 0x9b7   : > { %2118 = vmatprep.subr.bf16.mxu0 %v2630_v23 }
 0x9ba   : > { %2119 = vmatpush3.bf16.msra.mxu0 %v2280_v45 }
 0x9bb   : > { %2120 = vmatprep.subr.bf16.mxu0 %v2630_v23 }
 0x9be   : > { %2121 = vmatpush3.bf16.msra.mxu0 %v2281_v46 }
 0x9bf   : > { %2122 = vmatprep.subr.bf16.mxu0 %v2630_v23 }
 0x9c2   : > { %2123 = vmatpush3.bf16.msra.mxu0 %v2282_v47 }
 0xa88   : > { %v1468_v17 = vpop.f32.mrb[20].mxu0 }
 0xa89   : > { %v1474_v18 = vadd.f32 %v1468_v17, %v1313_v5  ;;  %v2106_v19 = vpop.f32.mrb[21].mxu0 }
 0xa8a   : > { %v1471_v21 = vpop.f32.mrb[22].mxu0 }
 0xa8b   : > { %v1475_v22 = vadd.f32 %v1474_v18, %v3125_v1  ;;  %v2107_v24 = vpop.f32.mrb[23].mxu0 }
 0xa8d   : > { %v1483_v26 = vadd.f32 %v1982_v20, %v1475_v22 }
 0xa8f   : > { %v1486_v28 = vsel %vm724_vm1, %v1483_v26, 0.0 }
 0xa90   : > { %1487 = vadd.xlane.f32.xlu0 %v1486_v28 }
 0xb1d   : > { %v1488_v29 = vpop.xlane.xlu0 %1487 }
 0xb1e   : > { %v1489_v30 = vmul.f32 0.03125, %v1488_v29 }
 0xb20   : > { %v1490_v31 = vsub.f32 %v1483_v26, %v1489_v30 }
 0xb22   : > { %v1491_v32 = vmul.f32 %v1490_v31, %v1490_v31 }
 0xb24   : > { %v1492_v33 = vsel %vm724_vm1, %v1491_v32, 0.0 }
 0xb25   : > { %1493 = vadd.xlane.f32.xlu1 %v1492_v33 }
 0xbb2   : > { %v1494_v1 = vpop.xlane.xlu1 %1493 }
 0xbb3   : > { %v1495_v36 = vmul.f32 0.03125, %v1494_v1 }
 0xbb5   : > { %v1496_v37 = vadd.f32 1e-05, %v1495_v36 }
 0xbb7   : > { %2301 = vrsqrt.f32 %v1496_v37 }
 0xbc1   : > { %v2302_v38 = vpop.eup %2301 }
 0xbc2   : > { %v1498_v40 = vmul.f32 %v2302_v38, %v1490_v31 }
 0xbc4   : > { %v1505_v42 = vmul.f32 %v1983_v39, %v1498_v40 }
 0xbc6   : > { %v1512_v43 = vadd.f32 %v1984_v41, %v1505_v42 }
 0xbc8   : > { %v1513_v44 = vpack.c.bf16 %v1512_v43, %v1512_v43 }
 0xbca   : > { %2113 = vmatmul.mubr.msk.bf16.vlgmr.msra.gmra.mrb[28].mxu1 %vm724_vm1, %v1513_v44 }
 0xc9d   : > { %v1574_v49 = vpop.f32.mrb[28].mxu1 }
 0xc9e   : > { %v1575_v50 = vadd.f32 %v1985_v48, %v1574_v49  ;;  %v2114_v51 = vpop.f32.mrb[29].mxu1 }
 0xc9f   : > { %v1577_v52 = vpop.f32.mrb[30].mxu1 }
 0xca0   : > { %v1581_v53 = vmul.f32 %v1575_v50, %v1575_v50  ;;  %v2115_v54 = vpop.f32.mrb[31].mxu1  ;;  %v1580_v59 = vmul.f32 0.5, %v1575_v50 }
 0xca2   : > { %v1582_v55 = vmul.f32 %v1581_v53, %v1575_v50 }
 0xca4   : > { %v1583_v27 = vmul.f32 0.044715, %v1582_v55 }
 0xca6   : > { %v1584_v56 = vadd.f32 %v1583_v27, %v1575_v50 }
 0xca8   : > { %v1585_v57 = vmul.f32 0.7978846, %v1584_v56 }
 0xcaa   : > { %2303 = vtanh.f32 %v1585_v57 }
 0xcb4   : > { %v2304_v58 = vpop.eup %2303 }
 0xcb5   : > { %v1587_v60 = vadd.f32 1.0, %v2304_v58 }
 0xcb7   : > { %v1588_v23 = vmul.f32 %v1587_v60, %v1580_v59 }
 0xcb9   : > { %v1589_v61 = vpack.c.bf16 %v1588_v23, %v1588_v23 }
 0xcbb   : > { %2125 = vmatmul.mubr.msk.bf16.vlgmr.msra.gmra.mrb[24].mxu0 %vm1629_vm6, %v1589_v61 }
 0xd8d   : > { %1678 = sbr.rel (%p1995_p5) target bundleno = 3476 (0xd94), region = 100 }
 0xd8e   : > { %v1667_v63 = vpop.f32.mrb[24].mxu0 }
 0xd8f   : > { %v1668_v0 = vadd.f32 %v1989_v62, %v1667_v63  ;;  %v2126_v2 = vpop.f32.mrb[25].mxu0 }
 0xd90   : > { %v1670_v3 = vpop.f32.mrb[26].mxu0 }
 0xd91   : > { %v1673_v4 = vadd.f32 %v1668_v0, %v1483_v26  ;;  %v2127_v5 = vpop.f32.mrb[27].mxu0 }
 0xd93   : > { %1674 = vst.msk [vmem:[#allocation2] sm:$0xff] %vm724_vm1, %v1673_v4  ;;  %1679 = vst.msk [vmem:[%s3121_s18] sm:$0xff] (!%p1995_p5), %vm724_vm1, %v1673_v4 }
 0xd94 PF: > { %s3436_s15 = sld [smem:[#allocation24_spill]]  ;;  %s3437_s4 = sld [smem:[#allocation44_spill]] }
 0xd95   : > { %s1694_s26 = sshll.u32 %s3121_s18, 4  ;;  %s1681_s30 = scalar_lea.sflag [#allocation5], %s3052_s19  ;;  %s1695_s26 = int_to_ptr.vmem [resolvable:$true] %s1694_s26 }
 0xd96   : > { %s2485_s29 = scalar_lea.vmem %s1695_s26, 128  ;;  %p3438_p4 = scmp.ne.s32.totalorder %s3403_s28, 0 }
 0xd97   : > { %p2486_p3 = scmp.ne.s32.totalorder %s1695_s26, %s2485_s29  ;;  %s2639_s2 = smov [#allocation14]  }
 0xd98   : > { %s2489_s14 = sshll.u32 %s2639_s2, 4  ;;  %s2490_s14 = int_to_ptr.vmem [resolvable:$false] %s2489_s14 }
 0xd99   : > { %p2487_p2 = pnand %p2486_p3, %p3438_p4  ;;  %s2491_s21 = scalar_lea.vmem %s2490_s14, 256 }
 0xd9a   : > { %s1997_s16 = sshll.u32 %s3436_s15, 7  ;;  %p2492_p11 = scmp.lt.s32.totalorder %s1695_s26, %s2490_s14 }
 0xd9b   : > { %s3274_s6 = scalar_lea.hbm %s3437_s4, %s1997_s16  ;;  %p2488_p7 = pneg %p2487_p2 }
 0xd9c   : > { %p2493_p0 = scmp.lt.s32.totalorder %s2491_s21, %s2485_s29 }
 0xd9e   : > { %p2494_p1 = por %p2493_p0, %p2492_p11 }
 0xda0   : > { %p2495_p12 = pnand %p2494_p1, %p2488_p7 }
 0xda2   : > { %2498 = shalt.err (!%p2495_p12)
}
 0xda3   : > { %s2499_s19 = scalar_lea.hbm %s3274_s6, 128  ;;  %s2503_s8 = scalar_lea.hbm %s3437_s4, 256 }
 0xda4   : > { %p2500_p13 = scmp.ne.s32.totalorder %s3274_s6, %s2499_s19  ;;  %p2504_p9 = scmp.lt.u32.totalorder %s3274_s6, %s3437_s4 }
 0xda5   : > { %p2505_p8 = scmp.lt.u32.totalorder %s2503_s8, %s2499_s19  ;;  %p2507_p3 = scmp.lt.u32.totalorder %s2499_s19, %s3274_s6 }
 0xda6   : > { %p2501_p6 = pnand %p2500_p13, %p3438_p4 }
 0xda7   : > { %p2506_p5 = por %p2505_p8, %p2504_p9 }
 0xda8   : > { %p2502_p10 = pneg %p2501_p6 }
 0xda9   : > { %p2508_p2 = por %p2507_p3, %p2506_p5 }
 0xdab   : > { %p2509_p7 = pnand %p2508_p2, %p2502_p10 }
 0xdad   : > { %2512 = shalt.err (!%p2509_p7)
}
 0xdae   : > { %2140 = dma.vmem_to_hbm [thread:$0]  (%p3438_p4), %s1695_s26, 128, %s3274_s6, %s1681_s30  }
 0xdaf PF: > { %s3439_s12 = sld [smem:[#allocation21_spill]]  ;;  %s3440_s23 = sld [smem:[#allocation32_spill]] }
 0xdb0   : > { %p2166_p11 = scmp.ge.s32.totalorder %s2619_s13, 2 }
 0xdb5   : > { %s1706_s27 = sand.u32 1, %s3439_s12   ;;  %p3441_p0 = scmp.ne.s32.totalorder %s3440_s23, 0 }
 0xdb6   : > { %s1707_s0 = scalar_lea.sflag [#allocation5], %s1706_s27 }
 0xdb7   : > { %p2162_p1 = pnand %p2166_p11, %p3441_p0 }
 0xdb9   : > { %2574 = dma.done.wait (!%p2162_p1), %s1707_s0, 128  }
 0xdba   : > { %2576 = vsyncadd (!%p2162_p1), %s1707_s0, 4294967168  ;;  %s37_s13 = sadd.s32 1, %s2619_s13   ;;  %s3442_s7 = sld [smem:[#allocation20_spill]] }
 0xdbb   : > { %p34_p12 = scmp.ge.s32.totalorder %s37_s13, 6   ;;  %s3443_s23 = sld [smem:[#allocation30_spill]] }
 0xdbc   : > { %s3444_s28 = sld [smem:[#allocation22_spill]]  ;;  %s3445_s26 = sld [smem:[#allocation31_spill]] }
 0xdbd   : > { %s3446_s27 = sld [smem:[#allocation25_spill]]  ;;  %s3447_s3 = sld [smem:[#allocation26_spill]] }
 0xdbe   : > { %s3448_s29 = sld [smem:[#allocation28_spill]]  ;;  %s3449_s30 = sld [smem:[#allocation29_spill]] }
 0xdbf   : > { %s3450_s21 = smov %s2583_s22  ;;  %s3452_s24 = smov %s2595_s25 }
 0xdc0   : > { %s3451_s22 = smov %s3442_s7  ;;  %36 = sbr.rel (!%p34_p12) target bundleno = 28 (0x1c), region = 200 }
 0xdc2   : > { %s3453_s25 = smov %s3444_s28 }
 0xdc3   : > { %s3454_s28 = smov %s3447_s3 }
 0xdc7   :  { %1712 = vsyncpa [#allocation4], 1 }
 0xdc8   :  { %1714 = vsyncpa [#allocation4 + $0x1], 1 }
 0xdc9   :  { %1715 = vsyncpa [#allocation7], 1 }
 0xdca   :  { %1717 = vsyncpa [#allocation7 + $0x1], 1 }
 0xdcb   :  { %1718 = vsyncpa [#allocation10], 1 }
 0xdcc   :  { %1720 = vsyncpa [#allocation10 + $0x1], 1 }
 0xdcd   :  { %1721 = vsyncpa [#allocation13], 1 }
 0xdce   :  { %1723 = vsyncpa [#allocation13 + $0x1], 1 }
 0xdcf   :  { %1724 = vsyncpa [#allocation5], 1 }
 0xdd0   :  { %1726 = vsyncpa [#allocation5 + $0x1], 1 }

</bundles_post_ra>
